<compile_context>
chip_gen: v7x
topology: tpu7x:2x2x1
jax: 0.10.0
libtpu: 0.0.40
codegen_flags: <defaults>
</compile_context>

<pallas_src>
import functools

import jax
import jax.numpy as jnp
from jax.experimental import pallas as pl
from jax.experimental.pallas import tpu as pltpu


# ----------------------------------------------------------------------------
# Kernels
# ----------------------------------------------------------------------------
def _conv_taps_kernel(x_ref, w_ref, b_ref, o_ref, *, offsets, lout,
                      relu_in, relu_out):
    """Fused conv:  out = [relu]( sum_t x[off_t:off_t+L] @ W_t + b )."""
    acc = None
    for t, off in enumerate(offsets):
        xw = x_ref[off:off + lout, :]            # (L, Cin) f32, contiguous
        if relu_in:
            xw = jnp.maximum(xw, 0.0)
        d = jnp.dot(xw.astype(w_ref.dtype), w_ref[t],
                    preferred_element_type=jnp.float32)
        acc = d if acc is None else acc + d
    acc = acc + b_ref[...]
    if relu_out:
        acc = jnp.maximum(acc, 0.0)
    o_ref[...] = acc.astype(o_ref.dtype)


def _resblock_kernel(x_ref, w1_ref, b1_ref, w2_ref, b2_ref, o_ref, *,
                     wi, lout):
    """Fused residual block: x + Conv1x1(ReLU(Conv3x3(ReLU(x)))).

    x_ref holds the zero-padded (pad=1) input flattened to (Hi*Wi, C); the
    intermediate (L, C/4) tensor never leaves VMEM and the skip connection is
    a shifted slice of the same resident tile.
    """
    acc = None
    for ki in range(3):
        for kj in range(3):
            off = ki * wi + kj
            xw = jnp.maximum(x_ref[off:off + lout, :], 0.0)     # ReLU(x)
            d = jnp.dot(xw.astype(w1_ref.dtype), w1_ref[ki * 3 + kj],
                        preferred_element_type=jnp.float32)
            acc = d if acc is None else acc + d
    t = jnp.maximum(acc + b1_ref[...], 0.0)                     # (L, C/4) f32
    y = jnp.dot(t.astype(w2_ref.dtype), w2_ref[...],
                preferred_element_type=jnp.float32)
    skip = x_ref[wi + 1:wi + 1 + lout, :]                       # center of pad
    y = y + b2_ref[...] + skip
    o_ref[...] = y.astype(o_ref.dtype)


# ----------------------------------------------------------------------------
# pallas_call wrappers
# ----------------------------------------------------------------------------
def _conv_taps_call(xf, wt, b2, *, offsets, lout, relu_in, relu_out):
    """xf: (N, Li, Ci) f32 flat tiles.  wt: (T, Ci, Cout).  b2: (1, Cout)."""
    N, Li, Ci = xf.shape
    T, _, Cout = wt.shape
    kernel = functools.partial(_conv_taps_kernel, offsets=tuple(offsets),
                               lout=lout, relu_in=relu_in, relu_out=relu_out)
    return pl.pallas_call(
        kernel,
        out_shape=jax.ShapeDtypeStruct((N, lout, Cout), jnp.float32),
        grid_spec=pltpu.PrefetchScalarGridSpec(
            num_scalar_prefetch=0,
            grid=(N,),
            in_specs=[pl.BlockSpec((None, Li, Ci), lambda n: (n, 0, 0)),
                      pl.BlockSpec((T, Ci, Cout), lambda n: (0, 0, 0)),
                      pl.BlockSpec((1, Cout), lambda n: (0, 0))],
            out_specs=pl.BlockSpec((None, lout, Cout), lambda n: (n, 0, 0)),
        ),
        compiler_params=pltpu.CompilerParams(
            dimension_semantics=("parallel",)),
    )(xf, wt, b2)


def _unflatten(y_flat, oh, ow, wi):
    """(N, (oh-1)*wi+ow, C) row-major-flat -> (N, oh, ow, C)."""
    N, lout, cout = y_flat.shape
    if wi == ow:
        return y_flat.reshape(N, oh, ow, cout)
    y = jnp.pad(y_flat, ((0, 0), (0, oh * wi - lout), (0, 0)))
    return y.reshape(N, oh, wi, cout)[:, :, :ow, :]


def _space_to_depth(xp):
    N, Hp, Wp, C = xp.shape
    x = xp.reshape(N, Hp // 2, 2, Wp // 2, 2, C)
    x = x.transpose(0, 1, 3, 2, 4, 5)
    return x.reshape(N, Hp // 2, Wp // 2, 4 * C)


def conv_s2_k4(x, w, b, *, relu_out, mxu_dtype):
    """Conv2d(kernel=4, stride=2, padding=1) (+ ReLU), NHWC in/out."""
    N, H, W, Cin = x.shape
    assert H % 2 == 0 and W % 2 == 0
    Cout = w.shape[0]
    oh, ow = H // 2, W // 2
    xp = jnp.pad(x.astype(jnp.float32), ((0, 0), (1, 1), (1, 1), (0, 0)))
    xs = _space_to_depth(xp)                       # (N, oh+1, ow+1, 4*Cin)
    wi = ow + 1
    xf = xs.reshape(N, (oh + 1) * wi, 4 * Cin)
    # (Cout,Cin,4,4) -> 4 taps of (4*Cin, Cout); intra-tap channel order (p,q,c)
    wt = jnp.transpose(w, (2, 3, 1, 0)).reshape(2, 2, 2, 2, Cin, Cout)
    wt = wt.transpose(0, 2, 1, 3, 4, 5).reshape(4, 4 * Cin, Cout)
    wt = wt.astype(mxu_dtype)
    b2 = b.reshape(1, Cout).astype(jnp.float32)
    lout = (oh - 1) * wi + ow
    offsets = tuple(a * wi + c for a in range(2) for c in range(2))
    yf = _conv_taps_call(xf, wt, b2, offsets=offsets, lout=lout,
                         relu_in=False, relu_out=relu_out)
    return _unflatten(yf, oh, ow, wi)


def conv_s1_k3(x, w, b, *, relu_out, mxu_dtype):
    """Conv2d(kernel=3, stride=1, padding=1) (+ ReLU), NHWC in/out."""
    N, H, W, Cin = x.shape
    Cout = w.shape[0]
    xp = jnp.pad(x.astype(jnp.float32), ((0, 0), (1, 1), (1, 1), (0, 0)))
    wi = W + 2
    xf = xp.reshape(N, (H + 2) * wi, Cin)
    wt = jnp.transpose(w, (2, 3, 1, 0)).reshape(9, Cin, Cout).astype(mxu_dtype)
    b2 = b.reshape(1, Cout).astype(jnp.float32)
    lout = (H - 1) * wi + W
    offsets = tuple(ki * wi + kj for ki in range(3) for kj in range(3))
    yf = _conv_taps_call(xf, wt, b2, offsets=offsets, lout=lout,
                         relu_in=False, relu_out=relu_out)
    return _unflatten(yf, H, W, wi)


def residual_block(x, w1, b1, w2, b2, *, mxu_dtype):
    """x + Conv1x1(ReLU(Conv3x3(ReLU(x)))) as one fused pallas_call."""
    N, H, W, C = x.shape
    C4 = w1.shape[0]
    xp = jnp.pad(x.astype(jnp.float32), ((0, 0), (1, 1), (1, 1), (0, 0)))
    wi = W + 2
    Li = (H + 2) * wi
    xf = xp.reshape(N, Li, C)
    w1t = jnp.transpose(w1, (2, 3, 1, 0)).reshape(9, C, C4).astype(mxu_dtype)
    w2t = jnp.transpose(w2, (2, 3, 1, 0)).reshape(C4, C).astype(mxu_dtype)
    b1v = b1.reshape(1, C4).astype(jnp.float32)
    b2v = b2.reshape(1, C).astype(jnp.float32)
    lout = (H - 1) * wi + W
    yf = pl.pallas_call(
        functools.partial(_resblock_kernel, wi=wi, lout=lout),
        out_shape=jax.ShapeDtypeStruct((N, lout, C), jnp.float32),
        grid_spec=pltpu.PrefetchScalarGridSpec(
            num_scalar_prefetch=0,
            grid=(N,),
            in_specs=[pl.BlockSpec((None, Li, C), lambda n: (n, 0, 0)),
                      pl.BlockSpec((9, C, C4), lambda n: (0, 0, 0)),
                      pl.BlockSpec((1, C4), lambda n: (0, 0)),
                      pl.BlockSpec((C4, C), lambda n: (0, 0)),
                      pl.BlockSpec((1, C), lambda n: (0, 0))],
            out_specs=pl.BlockSpec((None, lout, C), lambda n: (n, 0, 0)),
        ),
        compiler_params=pltpu.CompilerParams(
            dimension_semantics=("parallel",)),
    )(xf, w1t, b1v, w2t, b2v)
    return _unflatten(yf, H, W, wi)


# ----------------------------------------------------------------------------
# Parameters + forward pass
# ----------------------------------------------------------------------------
def init_params(key, input_channels=3, n_hid=64):
    def conv_param(k, cout, cin, kh, kw):
        kw_, kb_ = jax.random.split(k)
        scale = 1.0 / jnp.sqrt(cin * kh * kw)
        w = jax.random.normal(kw_, (cout, cin, kh, kw), jnp.float32) * scale
        b = jax.random.normal(kb_, (cout,), jnp.float32) * scale
        return w, b

    ks = jax.random.split(key, 7)
    p = {}
    p["c1"] = conv_param(ks[0], n_hid, input_channels, 4, 4)
    p["c2"] = conv_param(ks[1], 2 * n_hid, n_hid, 4, 4)
    p["c3"] = conv_param(ks[2], 2 * n_hid, 2 * n_hid, 3, 3)
    ch = 2 * n_hid // 4
    p["r1a"] = conv_param(ks[3], ch, 2 * n_hid, 3, 3)
    p["r1b"] = conv_param(ks[4], 2 * n_hid, ch, 1, 1)
    p["r2a"] = conv_param(ks[5], ch, 2 * n_hid, 3, 3)
    p["r2b"] = conv_param(ks[6], 2 * n_hid, ch, 1, 1)
    return p


def encoder_forward(params, x_nchw, *, mxu_dtype=jnp.bfloat16):
    x = jnp.transpose(x_nchw, (0, 2, 3, 1)).astype(jnp.float32)   # NCHW->NHWC
    x = conv_s2_k4(x, *params["c1"], relu_out=True, mxu_dtype=mxu_dtype)
    x = conv_s2_k4(x, *params["c2"], relu_out=True, mxu_dtype=mxu_dtype)
    x = conv_s1_k3(x, *params["c3"], relu_out=True, mxu_dtype=mxu_dtype)
    x = residual_block(x, *params["r1a"], *params["r1b"], mxu_dtype=mxu_dtype)
    x = residual_block(x, *params["r2a"], *params["r2b"], mxu_dtype=mxu_dtype)
    return jnp.transpose(x, (0, 3, 1, 2))                          # NHWC->NCHW


# ----------------------------------------------------------------------------
# Pure-JAX reference (lax.conv) mirroring the same MXU operand dtype.
# ----------------------------------------------------------------------------
def _conv_ref(x, w, b, stride, pad, mxu_dtype):
    y = jax.lax.conv_general_dilated(
        x.astype(mxu_dtype),
        jnp.transpose(w, (2, 3, 1, 0)).astype(mxu_dtype),
        window_strides=(stride, stride),
        padding=[(pad, pad), (pad, pad)],
        dimension_numbers=("NHWC", "HWIO", "NHWC"),
        preferred_element_type=jnp.float32)
    return y + b


def encoder_ref(params, x_nchw, *, mxu_dtype=jnp.bfloat16):
    x = jnp.transpose(x_nchw, (0, 2, 3, 1)).astype(jnp.float32)
    x = jax.nn.relu(_conv_ref(x, *params["c1"], 2, 1, mxu_dtype))
    x = jax.nn.relu(_conv_ref(x, *params["c2"], 2, 1, mxu_dtype))
    x = jax.nn.relu(_conv_ref(x, *params["c3"], 1, 1, mxu_dtype))
    for a, bname in (("r1a", "r1b"), ("r2a", "r2b")):
        t = jax.nn.relu(_conv_ref(jax.nn.relu(x), *params[a], 1, 1, mxu_dtype))
        x = x + _conv_ref(t, *params[bname], 1, 0, mxu_dtype)
    return jnp.transpose(x, (0, 3, 1, 2))


if __name__ == "__main__":
    key = jax.random.PRNGKey(0)
    k_x, k_p = jax.random.split(key)

    input_channels, n_hid = 3, 16
    x = jax.random.normal(k_x, (2, input_channels, 16, 16), jnp.float32)  # NCHW
    params = init_params(k_p, input_channels=input_channels, n_hid=n_hid)

    fwd = jax.jit(encoder_forward, static_argnames=("mxu_dtype",))
    ref = jax.jit(encoder_ref, static_argnames=("mxu_dtype",))

    # Default perf path: bf16 MXU operands, f32 accumulation.
    out = jax.block_until_ready(fwd(params, x))
    assert out.shape == (2, 2 * n_hid, 4, 4), out.shape

    # Exact-math config (f32 MXU) vs. the plain f32 lax.conv reference.
    out_f32 = jax.block_until_ready(fwd(params, x, mxu_dtype=jnp.float32))
    ref_f32 = jax.block_until_ready(ref(params, x, mxu_dtype=jnp.float32))
    assert jnp.allclose(out_f32, ref_f32, atol=1e-4, rtol=1e-4), \
        float(jnp.max(jnp.abs(out_f32 - ref_f32)))

    # Perf config vs. a reference that uses the same bf16 MXU operands.
    ref_bf16 = jax.block_until_ready(ref(params, x))
    assert jnp.allclose(out, ref_bf16, atol=2e-2, rtol=2e-2), \
        float(jnp.max(jnp.abs(out - ref_bf16)))

    print("KERNEL_OK")
</pallas_src>

<mosaic_0001>
module attributes {stable_mosaic.version = 11 : i64} {
  func.func @_conv_taps_kernel(%arg0: i32, %arg1: memref<1x81x12xf32, #tpu.memory_space<vmem>>, %arg2: memref<4x12x16xbf16, #tpu.memory_space<vmem>>, %arg3: memref<1x16xf32, #tpu.memory_space<vmem>>, %arg4: memref<1x71x16xf32, #tpu.memory_space<vmem>>) attributes {dimension_semantics = [#tpu.dimension_semantics<parallel>], iteration_bounds = array<i64: 2>, scalar_prefetch = 0 : i64, scratch_operands = 0 : i64, tpu.core_type = #tpu.core_type<tc>, window_params = [{transform_indices = @transform_0, window_bounds = array<i64: 1, 81, 12>}, {pipeline_mode = #tpu.pipeline_mode<synchronous>, transform_indices = @transform_1, window_bounds = array<i64: 4, 12, 16>}, {pipeline_mode = #tpu.pipeline_mode<synchronous>, transform_indices = @transform_2, window_bounds = array<i64: 1, 16>}, {transform_indices = @transform_3, window_bounds = array<i64: 1, 71, 16>}]} {
    %c0 = arith.constant 0 : index
    %c0_0 = arith.constant 0 : index
    %c0_1 = arith.constant 0 : index
    %0 = vector.load %arg1[%c0, %c0_0, %c0_1] : memref<1x81x12xf32, #tpu.memory_space<vmem>>, vector<1x71x12xf32>
    %1 = vector.shape_cast %0 : vector<1x71x12xf32> to vector<71x12xf32>
    %2 = arith.truncf %1 : vector<71x12xf32> to vector<71x12xbf16>
    %c0_2 = arith.constant 0 : index
    %c0_3 = arith.constant 0 : index
    %c0_4 = arith.constant 0 : index
    %3 = vector.load %arg2[%c0_2, %c0_3, %c0_4] : memref<4x12x16xbf16, #tpu.memory_space<vmem>>, vector<1x12x16xbf16>
    %4 = vector.shape_cast %3 : vector<1x12x16xbf16> to vector<12x16xbf16>
    %cst = arith.constant dense<0.000000e+00> : vector<71x16xf32>
    %5 = tpu.matmul %2, %4, %cst {dimension_numbers = #tpu.dot_dimension_numbers<[1], [0], [0], [1], [0, 0, 1, 1], [], []>} : vector<71x12xbf16>, vector<12x16xbf16>, vector<71x16xf32> -> vector<71x16xf32>
    %c0_5 = arith.constant 0 : index
    %c1 = arith.constant 1 : index
    %c0_6 = arith.constant 0 : index
    %6 = vector.load %arg1[%c0_5, %c1, %c0_6] : memref<1x81x12xf32, #tpu.memory_space<vmem>>, vector<1x71x12xf32>
    %7 = vector.shape_cast %6 : vector<1x71x12xf32> to vector<71x12xf32>
    %8 = arith.truncf %7 : vector<71x12xf32> to vector<71x12xbf16>
    %c1_7 = arith.constant 1 : index
    %c0_8 = arith.constant 0 : index
    %c0_9 = arith.constant 0 : index
    %9 = vector.load %arg2[%c1_7, %c0_8, %c0_9] : memref<4x12x16xbf16, #tpu.memory_space<vmem>>, vector<1x12x16xbf16>
    %10 = vector.shape_cast %9 : vector<1x12x16xbf16> to vector<12x16xbf16>
    %cst_10 = arith.constant dense<0.000000e+00> : vector<71x16xf32>
    %11 = tpu.matmul %8, %10, %cst_10 {dimension_numbers = #tpu.dot_dimension_numbers<[1], [0], [0], [1], [0, 0, 1, 1], [], []>} : vector<71x12xbf16>, vector<12x16xbf16>, vector<71x16xf32> -> vector<71x16xf32>
    %12 = arith.addf %5, %11 : vector<71x16xf32>
    %c0_11 = arith.constant 0 : index
    %c9 = arith.constant 9 : index
    %c0_12 = arith.constant 0 : index
    %13 = vector.load %arg1[%c0_11, %c9, %c0_12] : memref<1x81x12xf32, #tpu.memory_space<vmem>>, vector<1x71x12xf32>
    %14 = vector.shape_cast %13 : vector<1x71x12xf32> to vector<71x12xf32>
    %15 = arith.truncf %14 : vector<71x12xf32> to vector<71x12xbf16>
    %c2 = arith.constant 2 : index
    %c0_13 = arith.constant 0 : index
    %c0_14 = arith.constant 0 : index
    %16 = vector.load %arg2[%c2, %c0_13, %c0_14] : memref<4x12x16xbf16, #tpu.memory_space<vmem>>, vector<1x12x16xbf16>
    %17 = vector.shape_cast %16 : vector<1x12x16xbf16> to vector<12x16xbf16>
    %cst_15 = arith.constant dense<0.000000e+00> : vector<71x16xf32>
    %18 = tpu.matmul %15, %17, %cst_15 {dimension_numbers = #tpu.dot_dimension_numbers<[1], [0], [0], [1], [0, 0, 1, 1], [], []>} : vector<71x12xbf16>, vector<12x16xbf16>, vector<71x16xf32> -> vector<71x16xf32>
    %19 = arith.addf %12, %18 : vector<71x16xf32>
    %c0_16 = arith.constant 0 : index
    %c10 = arith.constant 10 : index
    %c0_17 = arith.constant 0 : index
    %20 = vector.load %arg1[%c0_16, %c10, %c0_17] : memref<1x81x12xf32, #tpu.memory_space<vmem>>, vector<1x71x12xf32>
    %21 = vector.shape_cast %20 : vector<1x71x12xf32> to vector<71x12xf32>
    %22 = arith.truncf %21 : vector<71x12xf32> to vector<71x12xbf16>
    %c3 = arith.constant 3 : index
    %c0_18 = arith.constant 0 : index
    %c0_19 = arith.constant 0 : index
    %23 = vector.load %arg2[%c3, %c0_18, %c0_19] : memref<4x12x16xbf16, #tpu.memory_space<vmem>>, vector<1x12x16xbf16>
    %24 = vector.shape_cast %23 : vector<1x12x16xbf16> to vector<12x16xbf16>
    %cst_20 = arith.constant dense<0.000000e+00> : vector<71x16xf32>
    %25 = tpu.matmul %22, %24, %cst_20 {dimension_numbers = #tpu.dot_dimension_numbers<[1], [0], [0], [1], [0, 0, 1, 1], [], []>} : vector<71x12xbf16>, vector<12x16xbf16>, vector<71x16xf32> -> vector<71x16xf32>
    %26 = arith.addf %19, %25 : vector<71x16xf32>
    %c0_21 = arith.constant 0 : index
    %c0_22 = arith.constant 0 : index
    %27 = vector.load %arg3[%c0_21, %c0_22] : memref<1x16xf32, #tpu.memory_space<vmem>>, vector<1x16xf32>
    %28 = vector.broadcast %27 : vector<1x16xf32> to vector<71x16xf32>
    %29 = arith.addf %26, %28 : vector<71x16xf32>
    %cst_23 = arith.constant 0.000000e+00 : f32
    %30 = vector.broadcast %cst_23 : f32 to vector<71x16xf32>
    %31 = arith.maximumf %29, %30 : vector<71x16xf32>
    %c0_24 = arith.constant 0 : index
    %c0_25 = arith.constant 0 : index
    %c0_26 = arith.constant 0 : index
    %32 = vector.load %arg4[%c0_24, %c0_25, %c0_26] : memref<1x71x16xf32, #tpu.memory_space<vmem>>, vector<1x71x16xf32>
    %33 = vector.shape_cast %32 : vector<1x71x16xf32> to vector<71x16xf32>
    %34 = vector.shape_cast %31 : vector<71x16xf32> to vector<1x71x16xf32>
    tpu.vector_store %arg4[%c0_24, %c0_25, %c0_26], %34 {strides = array<i32>} : memref<1x71x16xf32, #tpu.memory_space<vmem>>, vector<1x71x16xf32>,
    return
  }
  func.func @transform_0(%arg0: i32) -> (i32, i32, i32) {
    %c0_i32 = arith.constant 0 : i32
    %c0_i32_0 = arith.constant 0 : i32
    %c0_i32_1 = arith.constant 0 : i32
    return %arg0, %c0_i32, %c0_i32_0 : i32, i32, i32
  }
  func.func @transform_1(%arg0: i32) -> (i32, i32, i32) {
    %c0_i32 = arith.constant 0 : i32
    %c0_i32_0 = arith.constant 0 : i32
    %c0_i32_1 = arith.constant 0 : i32
    %c0_i32_2 = arith.constant 0 : i32
    return %c0_i32, %c0_i32_0, %c0_i32_1 : i32, i32, i32
  }
  func.func @transform_2(%arg0: i32) -> (i32, i32) {
    %c0_i32 = arith.constant 0 : i32
    %c0_i32_0 = arith.constant 0 : i32
    %c0_i32_1 = arith.constant 0 : i32
    return %c0_i32, %c0_i32_0 : i32, i32
  }
  func.func @transform_3(%arg0: i32) -> (i32, i32, i32) {
    %c0_i32 = arith.constant 0 : i32
    %c0_i32_0 = arith.constant 0 : i32
    %c0_i32_1 = arith.constant 0 : i32
    return %arg0, %c0_i32, %c0_i32_0 : i32, i32, i32
  }
}

module attributes {stable_mosaic.version = 11 : i64} {
  func.func @_conv_taps_kernel(%arg0: i32, %arg1: memref<1x25x64xf32, #tpu.memory_space<vmem>>, %arg2: memref<4x64x32xbf16, #tpu.memory_space<vmem>>, %arg3: memref<1x32xf32, #tpu.memory_space<vmem>>, %arg4: memref<1x19x32xf32, #tpu.memory_space<vmem>>) attributes {dimension_semantics = [#tpu.dimension_semantics<parallel>], iteration_bounds = array<i64: 2>, scalar_prefetch = 0 : i64, scratch_operands = 0 : i64, tpu.core_type = #tpu.core_type<tc>, window_params = [{transform_indices = @transform_0, window_bounds = array<i64: 1, 25, 64>}, {pipeline_mode = #tpu.pipeline_mode<synchronous>, transform_indices = @transform_1, window_bounds = array<i64: 4, 64, 32>}, {pipeline_mode = #tpu.pipeline_mode<synchronous>, transform_indices = @transform_2, window_bounds = array<i64: 1, 32>}, {transform_indices = @transform_3, window_bounds = array<i64: 1, 19, 32>}]} {
    %c0 = arith.constant 0 : index
    %c0_0 = arith.constant 0 : index
    %c0_1 = arith.constant 0 : index
    %0 = vector.load %arg1[%c0, %c0_0, %c0_1] : memref<1x25x64xf32, #tpu.memory_space<vmem>>, vector<1x19x64xf32>
    %1 = vector.shape_cast %0 : vector<1x19x64xf32> to vector<19x64xf32>
    %2 = arith.truncf %1 : vector<19x64xf32> to vector<19x64xbf16>
    %c0_2 = arith.constant 0 : index
    %c0_3 = arith.constant 0 : index
    %c0_4 = arith.constant 0 : index
    %3 = vector.load %arg2[%c0_2, %c0_3, %c0_4] : memref<4x64x32xbf16, #tpu.memory_space<vmem>>, vector<1x64x32xbf16>
    %4 = vector.shape_cast %3 : vector<1x64x32xbf16> to vector<64x32xbf16>
    %cst = arith.constant dense<0.000000e+00> : vector<19x32xf32>
    %5 = tpu.matmul %2, %4, %cst {dimension_numbers = #tpu.dot_dimension_numbers<[1], [0], [0], [1], [0, 0, 1, 1], [], []>} : vector<19x64xbf16>, vector<64x32xbf16>, vector<19x32xf32> -> vector<19x32xf32>
    %c0_5 = arith.constant 0 : index
    %c1 = arith.constant 1 : index
    %c0_6 = arith.constant 0 : index
    %6 = vector.load %arg1[%c0_5, %c1, %c0_6] : memref<1x25x64xf32, #tpu.memory_space<vmem>>, vector<1x19x64xf32>
    %7 = vector.shape_cast %6 : vector<1x19x64xf32> to vector<19x64xf32>
    %8 = arith.truncf %7 : vector<19x64xf32> to vector<19x64xbf16>
    %c1_7 = arith.constant 1 : index
    %c0_8 = arith.constant 0 : index
    %c0_9 = arith.constant 0 : index
    %9 = vector.load %arg2[%c1_7, %c0_8, %c0_9] : memref<4x64x32xbf16, #tpu.memory_space<vmem>>, vector<1x64x32xbf16>
    %10 = vector.shape_cast %9 : vector<1x64x32xbf16> to vector<64x32xbf16>
    %cst_10 = arith.constant dense<0.000000e+00> : vector<19x32xf32>
    %11 = tpu.matmul %8, %10, %cst_10 {dimension_numbers = #tpu.dot_dimension_numbers<[1], [0], [0], [1], [0, 0, 1, 1], [], []>} : vector<19x64xbf16>, vector<64x32xbf16>, vector<19x32xf32> -> vector<19x32xf32>
    %12 = arith.addf %5, %11 : vector<19x32xf32>
    %c0_11 = arith.constant 0 : index
    %c5 = arith.constant 5 : index
    %c0_12 = arith.constant 0 : index
    %13 = vector.load %arg1[%c0_11, %c5, %c0_12] : memref<1x25x64xf32, #tpu.memory_space<vmem>>, vector<1x19x64xf32>
    %14 = vector.shape_cast %13 : vector<1x19x64xf32> to vector<19x64xf32>
    %15 = arith.truncf %14 : vector<19x64xf32> to vector<19x64xbf16>
    %c2 = arith.constant 2 : index
    %c0_13 = arith.constant 0 : index
    %c0_14 = arith.constant 0 : index
    %16 = vector.load %arg2[%c2, %c0_13, %c0_14] : memref<4x64x32xbf16, #tpu.memory_space<vmem>>, vector<1x64x32xbf16>
    %17 = vector.shape_cast %16 : vector<1x64x32xbf16> to vector<64x32xbf16>
    %cst_15 = arith.constant dense<0.000000e+00> : vector<19x32xf32>
    %18 = tpu.matmul %15, %17, %cst_15 {dimension_numbers = #tpu.dot_dimension_numbers<[1], [0], [0], [1], [0, 0, 1, 1], [], []>} : vector<19x64xbf16>, vector<64x32xbf16>, vector<19x32xf32> -> vector<19x32xf32>
    %19 = arith.addf %12, %18 : vector<19x32xf32>
    %c0_16 = arith.constant 0 : index
    %c6 = arith.constant 6 : index
    %c0_17 = arith.constant 0 : index
    %20 = vector.load %arg1[%c0_16, %c6, %c0_17] : memref<1x25x64xf32, #tpu.memory_space<vmem>>, vector<1x19x64xf32>
    %21 = vector.shape_cast %20 : vector<1x19x64xf32> to vector<19x64xf32>
    %22 = arith.truncf %21 : vector<19x64xf32> to vector<19x64xbf16>
    %c3 = arith.constant 3 : index
    %c0_18 = arith.constant 0 : index
    %c0_19 = arith.constant 0 : index
    %23 = vector.load %arg2[%c3, %c0_18, %c0_19] : memref<4x64x32xbf16, #tpu.memory_space<vmem>>, vector<1x64x32xbf16>
    %24 = vector.shape_cast %23 : vector<1x64x32xbf16> to vector<64x32xbf16>
    %cst_20 = arith.constant dense<0.000000e+00> : vector<19x32xf32>
    %25 = tpu.matmul %22, %24, %cst_20 {dimension_numbers = #tpu.dot_dimension_numbers<[1], [0], [0], [1], [0, 0, 1, 1], [], []>} : vector<19x64xbf16>, vector<64x32xbf16>, vector<19x32xf32> -> vector<19x32xf32>
    %26 = arith.addf %19, %25 : vector<19x32xf32>
    %c0_21 = arith.constant 0 : index
    %c0_22 = arith.constant 0 : index
    %27 = vector.load %arg3[%c0_21, %c0_22] : memref<1x32xf32, #tpu.memory_space<vmem>>, vector<1x32xf32>
    %28 = vector.broadcast %27 : vector<1x32xf32> to vector<19x32xf32>
    %29 = arith.addf %26, %28 : vector<19x32xf32>
    %cst_23 = arith.constant 0.000000e+00 : f32
    %30 = vector.broadcast %cst_23 : f32 to vector<19x32xf32>
    %31 = arith.maximumf %29, %30 : vector<19x32xf32>
    %c0_24 = arith.constant 0 : index
    %c0_25 = arith.constant 0 : index
    %c0_26 = arith.constant 0 : index
    %32 = vector.load %arg4[%c0_24, %c0_25, %c0_26] : memref<1x19x32xf32, #tpu.memory_space<vmem>>, vector<1x19x32xf32>
    %33 = vector.shape_cast %32 : vector<1x19x32xf32> to vector<19x32xf32>
    %34 = vector.shape_cast %31 : vector<19x32xf32> to vector<1x19x32xf32>
    tpu.vector_store %arg4[%c0_24, %c0_25, %c0_26], %34 {strides = array<i32>} : memref<1x19x32xf32, #tpu.memory_space<vmem>>, vector<1x19x32xf32>,
    return
  }
  func.func @transform_0(%arg0: i32) -> (i32, i32, i32) {
    %c0_i32 = arith.constant 0 : i32
    %c0_i32_0 = arith.constant 0 : i32
    %c0_i32_1 = arith.constant 0 : i32
    return %arg0, %c0_i32, %c0_i32_0 : i32, i32, i32
  }
  func.func @transform_1(%arg0: i32) -> (i32, i32, i32) {
    %c0_i32 = arith.constant 0 : i32
    %c0_i32_0 = arith.constant 0 : i32
    %c0_i32_1 = arith.constant 0 : i32
    %c0_i32_2 = arith.constant 0 : i32
    return %c0_i32, %c0_i32_0, %c0_i32_1 : i32, i32, i32
  }
  func.func @transform_2(%arg0: i32) -> (i32, i32) {
    %c0_i32 = arith.constant 0 : i32
    %c0_i32_0 = arith.constant 0 : i32
    %c0_i32_1 = arith.constant 0 : i32
    return %c0_i32, %c0_i32_0 : i32, i32
  }
  func.func @transform_3(%arg0: i32) -> (i32, i32, i32) {
    %c0_i32 = arith.constant 0 : i32
    %c0_i32_0 = arith.constant 0 : i32
    %c0_i32_1 = arith.constant 0 : i32
    return %arg0, %c0_i32, %c0_i32_0 : i32, i32, i32
  }
}

module attributes {stable_mosaic.version = 11 : i64} {
  func.func @_conv_taps_kernel(%arg0: i32, %arg1: memref<1x36x32xf32, #tpu.memory_space<vmem>>, %arg2: memref<9x32x32xbf16, #tpu.memory_space<vmem>>, %arg3: memref<1x32xf32, #tpu.memory_space<vmem>>, %arg4: memref<1x22x32xf32, #tpu.memory_space<vmem>>) attributes {dimension_semantics = [#tpu.dimension_semantics<parallel>], iteration_bounds = array<i64: 2>, scalar_prefetch = 0 : i64, scratch_operands = 0 : i64, tpu.core_type = #tpu.core_type<tc>, window_params = [{transform_indices = @transform_0, window_bounds = array<i64: 1, 36, 32>}, {pipeline_mode = #tpu.pipeline_mode<synchronous>, transform_indices = @transform_1, window_bounds = array<i64: 9, 32, 32>}, {pipeline_mode = #tpu.pipeline_mode<synchronous>, transform_indices = @transform_2, window_bounds = array<i64: 1, 32>}, {transform_indices = @transform_3, window_bounds = array<i64: 1, 22, 32>}]} {
    %c0 = arith.constant 0 : index
    %c0_0 = arith.constant 0 : index
    %c0_1 = arith.constant 0 : index
    %0 = vector.load %arg1[%c0, %c0_0, %c0_1] : memref<1x36x32xf32, #tpu.memory_space<vmem>>, vector<1x22x32xf32>
    %1 = vector.shape_cast %0 : vector<1x22x32xf32> to vector<22x32xf32>
    %2 = arith.truncf %1 : vector<22x32xf32> to vector<22x32xbf16>
    %c0_2 = arith.constant 0 : index
    %c0_3 = arith.constant 0 : index
    %c0_4 = arith.constant 0 : index
    %3 = vector.load %arg2[%c0_2, %c0_3, %c0_4] : memref<9x32x32xbf16, #tpu.memory_space<vmem>>, vector<1x32x32xbf16>
    %4 = vector.shape_cast %3 : vector<1x32x32xbf16> to vector<32x32xbf16>
    %cst = arith.constant dense<0.000000e+00> : vector<22x32xf32>
    %5 = tpu.matmul %2, %4, %cst {dimension_numbers = #tpu.dot_dimension_numbers<[1], [0], [0], [1], [0, 0, 1, 1], [], []>} : vector<22x32xbf16>, vector<32x32xbf16>, vector<22x32xf32> -> vector<22x32xf32>
    %c0_5 = arith.constant 0 : index
    %c1 = arith.constant 1 : index
    %c0_6 = arith.constant 0 : index
    %6 = vector.load %arg1[%c0_5, %c1, %c0_6] : memref<1x36x32xf32, #tpu.memory_space<vmem>>, vector<1x22x32xf32>
    %7 = vector.shape_cast %6 : vector<1x22x32xf32> to vector<22x32xf32>
    %8 = arith.truncf %7 : vector<22x32xf32> to vector<22x32xbf16>
    %c1_7 = arith.constant 1 : index
    %c0_8 = arith.constant 0 : index
    %c0_9 = arith.constant 0 : index
    %9 = vector.load %arg2[%c1_7, %c0_8, %c0_9] : memref<9x32x32xbf16, #tpu.memory_space<vmem>>, vector<1x32x32xbf16>
    %10 = vector.shape_cast %9 : vector<1x32x32xbf16> to vector<32x32xbf16>
    %cst_10 = arith.constant dense<0.000000e+00> : vector<22x32xf32>
    %11 = tpu.matmul %8, %10, %cst_10 {dimension_numbers = #tpu.dot_dimension_numbers<[1], [0], [0], [1], [0, 0, 1, 1], [], []>} : vector<22x32xbf16>, vector<32x32xbf16>, vector<22x32xf32> -> vector<22x32xf32>
    %12 = arith.addf %5, %11 : vector<22x32xf32>
    %c0_11 = arith.constant 0 : index
    %c2 = arith.constant 2 : index
    %c0_12 = arith.constant 0 : index
    %13 = vector.load %arg1[%c0_11, %c2, %c0_12] : memref<1x36x32xf32, #tpu.memory_space<vmem>>, vector<1x22x32xf32>
    %14 = vector.shape_cast %13 : vector<1x22x32xf32> to vector<22x32xf32>
    %15 = arith.truncf %14 : vector<22x32xf32> to vector<22x32xbf16>
    %c2_13 = arith.constant 2 : index
    %c0_14 = arith.constant 0 : index
    %c0_15 = arith.constant 0 : index
    %16 = vector.load %arg2[%c2_13, %c0_14, %c0_15] : memref<9x32x32xbf16, #tpu.memory_space<vmem>>, vector<1x32x32xbf16>
    %17 = vector.shape_cast %16 : vector<1x32x32xbf16> to vector<32x32xbf16>
    %cst_16 = arith.constant dense<0.000000e+00> : vector<22x32xf32>
    %18 = tpu.matmul %15, %17, %cst_16 {dimension_numbers = #tpu.dot_dimension_numbers<[1], [0], [0], [1], [0, 0, 1, 1], [], []>} : vector<22x32xbf16>, vector<32x32xbf16>, vector<22x32xf32> -> vector<22x32xf32>
    %19 = arith.addf %12, %18 : vector<22x32xf32>
    %c0_17 = arith.constant 0 : index
    %c6 = arith.constant 6 : index
    %c0_18 = arith.constant 0 : index
    %20 = vector.load %arg1[%c0_17, %c6, %c0_18] : memref<1x36x32xf32, #tpu.memory_space<vmem>>, vector<1x22x32xf32>
    %21 = vector.shape_cast %20 : vector<1x22x32xf32> to vector<22x32xf32>
    %22 = arith.truncf %21 : vector<22x32xf32> to vector<22x32xbf16>
    %c3 = arith.constant 3 : index
    %c0_19 = arith.constant 0 : index
    %c0_20 = arith.constant 0 : index
    %23 = vector.load %arg2[%c3, %c0_19, %c0_20] : memref<9x32x32xbf16, #tpu.memory_space<vmem>>, vector<1x32x32xbf16>
    %24 = vector.shape_cast %23 : vector<1x32x32xbf16> to vector<32x32xbf16>
    %cst_21 = arith.constant dense<0.000000e+00> : vector<22x32xf32>
    %25 = tpu.matmul %22, %24, %cst_21 {dimension_numbers = #tpu.dot_dimension_numbers<[1], [0], [0], [1], [0, 0, 1, 1], [], []>} : vector<22x32xbf16>, vector<32x32xbf16>, vector<22x32xf32> -> vector<22x32xf32>
    %26 = arith.addf %19, %25 : vector<22x32xf32>
    %c0_22 = arith.constant 0 : index
    %c7 = arith.constant 7 : index
    %c0_23 = arith.constant 0 : index
    %27 = vector.load %arg1[%c0_22, %c7, %c0_23] : memref<1x36x32xf32, #tpu.memory_space<vmem>>, vector<1x22x32xf32>
    %28 = vector.shape_cast %27 : vector<1x22x32xf32> to vector<22x32xf32>
    %29 = arith.truncf %28 : vector<22x32xf32> to vector<22x32xbf16>
    %c4 = arith.constant 4 : index
    %c0_24 = arith.constant 0 : index
    %c0_25 = arith.constant 0 : index
    %30 = vector.load %arg2[%c4, %c0_24, %c0_25] : memref<9x32x32xbf16, #tpu.memory_space<vmem>>, vector<1x32x32xbf16>
    %31 = vector.shape_cast %30 : vector<1x32x32xbf16> to vector<32x32xbf16>
    %cst_26 = arith.constant dense<0.000000e+00> : vector<22x32xf32>
    %32 = tpu.matmul %29, %31, %cst_26 {dimension_numbers = #tpu.dot_dimension_numbers<[1], [0], [0], [1], [0, 0, 1, 1], [], []>} : vector<22x32xbf16>, vector<32x32xbf16>, vector<22x32xf32> -> vector<22x32xf32>
    %33 = arith.addf %26, %32 : vector<22x32xf32>
    %c0_27 = arith.constant 0 : index
    %c8 = arith.constant 8 : index
    %c0_28 = arith.constant 0 : index
    %34 = vector.load %arg1[%c0_27, %c8, %c0_28] : memref<1x36x32xf32, #tpu.memory_space<vmem>>, vector<1x22x32xf32>
    %35 = vector.shape_cast %34 : vector<1x22x32xf32> to vector<22x32xf32>
    %36 = arith.truncf %35 : vector<22x32xf32> to vector<22x32xbf16>
    %c5 = arith.constant 5 : index
    %c0_29 = arith.constant 0 : index
    %c0_30 = arith.constant 0 : index
    %37 = vector.load %arg2[%c5, %c0_29, %c0_30] : memref<9x32x32xbf16, #tpu.memory_space<vmem>>, vector<1x32x32xbf16>
    %38 = vector.shape_cast %37 : vector<1x32x32xbf16> to vector<32x32xbf16>
    %cst_31 = arith.constant dense<0.000000e+00> : vector<22x32xf32>
    %39 = tpu.matmul %36, %38, %cst_31 {dimension_numbers = #tpu.dot_dimension_numbers<[1], [0], [0], [1], [0, 0, 1, 1], [], []>} : vector<22x32xbf16>, vector<32x32xbf16>, vector<22x32xf32> -> vector<22x32xf32>
    %40 = arith.addf %33, %39 : vector<22x32xf32>
    %c0_32 = arith.constant 0 : index
    %c12 = arith.constant 12 : index
    %c0_33 = arith.constant 0 : index
    %41 = vector.load %arg1[%c0_32, %c12, %c0_33] : memref<1x36x32xf32, #tpu.memory_space<vmem>>, vector<1x22x32xf32>
    %42 = vector.shape_cast %41 : vector<1x22x32xf32> to vector<22x32xf32>
    %43 = arith.truncf %42 : vector<22x32xf32> to vector<22x32xbf16>
    %c6_34 = arith.constant 6 : index
    %c0_35 = arith.constant 0 : index
    %c0_36 = arith.constant 0 : index
    %44 = vector.load %arg2[%c6_34, %c0_35, %c0_36] : memref<9x32x32xbf16, #tpu.memory_space<vmem>>, vector<1x32x32xbf16>
    %45 = vector.shape_cast %44 : vector<1x32x32xbf16> to vector<32x32xbf16>
    %cst_37 = arith.constant dense<0.000000e+00> : vector<22x32xf32>
    %46 = tpu.matmul %43, %45, %cst_37 {dimension_numbers = #tpu.dot_dimension_numbers<[1], [0], [0], [1], [0, 0, 1, 1], [], []>} : vector<22x32xbf16>, vector<32x32xbf16>, vector<22x32xf32> -> vector<22x32xf32>
    %47 = arith.addf %40, %46 : vector<22x32xf32>
    %c0_38 = arith.constant 0 : index
    %c13 = arith.constant 13 : index
    %c0_39 = arith.constant 0 : index
    %48 = vector.load %arg1[%c0_38, %c13, %c0_39] : memref<1x36x32xf32, #tpu.memory_space<vmem>>, vector<1x22x32xf32>
    %49 = vector.shape_cast %48 : vector<1x22x32xf32> to vector<22x32xf32>
    %50 = arith.truncf %49 : vector<22x32xf32> to vector<22x32xbf16>
    %c7_40 = arith.constant 7 : index
    %c0_41 = arith.constant 0 : index
    %c0_42 = arith.constant 0 : index
    %51 = vector.load %arg2[%c7_40, %c0_41, %c0_42] : memref<9x32x32xbf16, #tpu.memory_space<vmem>>, vector<1x32x32xbf16>
    %52 = vector.shape_cast %51 : vector<1x32x32xbf16> to vector<32x32xbf16>
    %cst_43 = arith.constant dense<0.000000e+00> : vector<22x32xf32>
    %53 = tpu.matmul %50, %52, %cst_43 {dimension_numbers = #tpu.dot_dimension_numbers<[1], [0], [0], [1], [0, 0, 1, 1], [], []>} : vector<22x32xbf16>, vector<32x32xbf16>, vector<22x32xf32> -> vector<22x32xf32>
    %54 = arith.addf %47, %53 : vector<22x32xf32>
    %c0_44 = arith.constant 0 : index
    %c14 = arith.constant 14 : index
    %c0_45 = arith.constant 0 : index
    %55 = vector.load %arg1[%c0_44, %c14, %c0_45] : memref<1x36x32xf32, #tpu.memory_space<vmem>>, vector<1x22x32xf32>
    %56 = vector.shape_cast %55 : vector<1x22x32xf32> to vector<22x32xf32>
    %57 = arith.truncf %56 : vector<22x32xf32> to vector<22x32xbf16>
    %c8_46 = arith.constant 8 : index
    %c0_47 = arith.constant 0 : index
    %c0_48 = arith.constant 0 : index
    %58 = vector.load %arg2[%c8_46, %c0_47, %c0_48] : memref<9x32x32xbf16, #tpu.memory_space<vmem>>, vector<1x32x32xbf16>
    %59 = vector.shape_cast %58 : vector<1x32x32xbf16> to vector<32x32xbf16>
    %cst_49 = arith.constant dense<0.000000e+00> : vector<22x32xf32>
    %60 = tpu.matmul %57, %59, %cst_49 {dimension_numbers = #tpu.dot_dimension_numbers<[1], [0], [0], [1], [0, 0, 1, 1], [], []>} : vector<22x32xbf16>, vector<32x32xbf16>, vector<22x32xf32> -> vector<22x32xf32>
    %61 = arith.addf %54, %60 : vector<22x32xf32>
    %c0_50 = arith.constant 0 : index
    %c0_51 = arith.constant 0 : index
    %62 = vector.load %arg3[%c0_50, %c0_51] : memref<1x32xf32, #tpu.memory_space<vmem>>, vector<1x32xf32>
    %63 = vector.broadcast %62 : vector<1x32xf32> to vector<22x32xf32>
    %64 = arith.addf %61, %63 : vector<22x32xf32>
    %cst_52 = arith.constant 0.000000e+00 : f32
    %65 = vector.broadcast %cst_52 : f32 to vector<22x32xf32>
    %66 = arith.maximumf %64, %65 : vector<22x32xf32>
    %c0_53 = arith.constant 0 : index
    %c0_54 = arith.constant 0 : index
    %c0_55 = arith.constant 0 : index
    %67 = vector.load %arg4[%c0_53, %c0_54, %c0_55] : memref<1x22x32xf32, #tpu.memory_space<vmem>>, vector<1x22x32xf32>
    %68 = vector.shape_cast %67 : vector<1x22x32xf32> to vector<22x32xf32>
    %69 = vector.shape_cast %66 : vector<22x32xf32> to vector<1x22x32xf32>
    tpu.vector_store %arg4[%c0_53, %c0_54, %c0_55], %69 {strides = array<i32>} : memref<1x22x32xf32, #tpu.memory_space<vmem>>, vector<1x22x32xf32>,
    return
  }
  func.func @transform_0(%arg0: i32) -> (i32, i32, i32) {
    %c0_i32 = arith.constant 0 : i32
    %c0_i32_0 = arith.constant 0 : i32
    %c0_i32_1 = arith.constant 0 : i32
    return %arg0, %c0_i32, %c0_i32_0 : i32, i32, i32
  }
  func.func @transform_1(%arg0: i32) -> (i32, i32, i32) {
    %c0_i32 = arith.constant 0 : i32
    %c0_i32_0 = arith.constant 0 : i32
    %c0_i32_1 = arith.constant 0 : i32
    %c0_i32_2 = arith.constant 0 : i32
    return %c0_i32, %c0_i32_0, %c0_i32_1 : i32, i32, i32
  }
  func.func @transform_2(%arg0: i32) -> (i32, i32) {
    %c0_i32 = arith.constant 0 : i32
    %c0_i32_0 = arith.constant 0 : i32
    %c0_i32_1 = arith.constant 0 : i32
    return %c0_i32, %c0_i32_0 : i32, i32
  }
  func.func @transform_3(%arg0: i32) -> (i32, i32, i32) {
    %c0_i32 = arith.constant 0 : i32
    %c0_i32_0 = arith.constant 0 : i32
    %c0_i32_1 = arith.constant 0 : i32
    return %arg0, %c0_i32, %c0_i32_0 : i32, i32, i32
  }
}

module attributes {stable_mosaic.version = 11 : i64} {
  func.func @_resblock_kernel(%arg0: i32, %arg1: memref<1x36x32xf32, #tpu.memory_space<vmem>>, %arg2: memref<9x32x8xbf16, #tpu.memory_space<vmem>>, %arg3: memref<1x8xf32, #tpu.memory_space<vmem>>, %arg4: memref<8x32xbf16, #tpu.memory_space<vmem>>, %arg5: memref<1x32xf32, #tpu.memory_space<vmem>>, %arg6: memref<1x22x32xf32, #tpu.memory_space<vmem>>) attributes {dimension_semantics = [#tpu.dimension_semantics<parallel>], iteration_bounds = array<i64: 2>, scalar_prefetch = 0 : i64, scratch_operands = 0 : i64, tpu.core_type = #tpu.core_type<tc>, window_params = [{transform_indices = @transform_0, window_bounds = array<i64: 1, 36, 32>}, {pipeline_mode = #tpu.pipeline_mode<synchronous>, transform_indices = @transform_1, window_bounds = array<i64: 9, 32, 8>}, {pipeline_mode = #tpu.pipeline_mode<synchronous>, transform_indices = @transform_2, window_bounds = array<i64: 1, 8>}, {pipeline_mode = #tpu.pipeline_mode<synchronous>, transform_indices = @transform_3, window_bounds = array<i64: 8, 32>}, {pipeline_mode = #tpu.pipeline_mode<synchronous>, transform_indices = @transform_4, window_bounds = array<i64: 1, 32>}, {transform_indices = @transform_5, window_bounds = array<i64: 1, 22, 32>}]} {
    %c0 = arith.constant 0 : index
    %c0_0 = arith.constant 0 : index
    %c0_1 = arith.constant 0 : index
    %0 = vector.load %arg1[%c0, %c0_0, %c0_1] : memref<1x36x32xf32, #tpu.memory_space<vmem>>, vector<1x22x32xf32>
    %1 = vector.shape_cast %0 : vector<1x22x32xf32> to vector<22x32xf32>
    %cst = arith.constant 0.000000e+00 : f32
    %2 = vector.broadcast %cst : f32 to vector<22x32xf32>
    %3 = arith.maximumf %1, %2 : vector<22x32xf32>
    %4 = arith.truncf %3 : vector<22x32xf32> to vector<22x32xbf16>
    %c0_2 = arith.constant 0 : index
    %c0_3 = arith.constant 0 : index
    %c0_4 = arith.constant 0 : index
    %5 = vector.load %arg2[%c0_2, %c0_3, %c0_4] : memref<9x32x8xbf16, #tpu.memory_space<vmem>>, vector<1x32x8xbf16>
    %6 = vector.shape_cast %5 : vector<1x32x8xbf16> to vector<32x8xbf16>
    %cst_5 = arith.constant dense<0.000000e+00> : vector<22x8xf32>
    %7 = tpu.matmul %4, %6, %cst_5 {dimension_numbers = #tpu.dot_dimension_numbers<[1], [0], [0], [1], [0, 0, 1, 1], [], []>} : vector<22x32xbf16>, vector<32x8xbf16>, vector<22x8xf32> -> vector<22x8xf32>
    %c0_6 = arith.constant 0 : index
    %c1 = arith.constant 1 : index
    %c0_7 = arith.constant 0 : index
    %8 = vector.load %arg1[%c0_6, %c1, %c0_7] : memref<1x36x32xf32, #tpu.memory_space<vmem>>, vector<1x22x32xf32>
    %9 = vector.shape_cast %8 : vector<1x22x32xf32> to vector<22x32xf32>
    %cst_8 = arith.constant 0.000000e+00 : f32
    %10 = vector.broadcast %cst_8 : f32 to vector<22x32xf32>
    %11 = arith.maximumf %9, %10 : vector<22x32xf32>
    %12 = arith.truncf %11 : vector<22x32xf32> to vector<22x32xbf16>
    %c1_9 = arith.constant 1 : index
    %c0_10 = arith.constant 0 : index
    %c0_11 = arith.constant 0 : index
    %13 = vector.load %arg2[%c1_9, %c0_10, %c0_11] : memref<9x32x8xbf16, #tpu.memory_space<vmem>>, vector<1x32x8xbf16>
    %14 = vector.shape_cast %13 : vector<1x32x8xbf16> to vector<32x8xbf16>
    %cst_12 = arith.constant dense<0.000000e+00> : vector<22x8xf32>
    %15 = tpu.matmul %12, %14, %cst_12 {dimension_numbers = #tpu.dot_dimension_numbers<[1], [0], [0], [1], [0, 0, 1, 1], [], []>} : vector<22x32xbf16>, vector<32x8xbf16>, vector<22x8xf32> -> vector<22x8xf32>
    %16 = arith.addf %7, %15 : vector<22x8xf32>
    %c0_13 = arith.constant 0 : index
    %c2 = arith.constant 2 : index
    %c0_14 = arith.constant 0 : index
    %17 = vector.load %arg1[%c0_13, %c2, %c0_14] : memref<1x36x32xf32, #tpu.memory_space<vmem>>, vector<1x22x32xf32>
    %18 = vector.shape_cast %17 : vector<1x22x32xf32> to vector<22x32xf32>
    %cst_15 = arith.constant 0.000000e+00 : f32
    %19 = vector.broadcast %cst_15 : f32 to vector<22x32xf32>
    %20 = arith.maximumf %18, %19 : vector<22x32xf32>
    %21 = arith.truncf %20 : vector<22x32xf32> to vector<22x32xbf16>
    %c2_16 = arith.constant 2 : index
    %c0_17 = arith.constant 0 : index
    %c0_18 = arith.constant 0 : index
    %22 = vector.load %arg2[%c2_16, %c0_17, %c0_18] : memref<9x32x8xbf16, #tpu.memory_space<vmem>>, vector<1x32x8xbf16>
    %23 = vector.shape_cast %22 : vector<1x32x8xbf16> to vector<32x8xbf16>
    %cst_19 = arith.constant dense<0.000000e+00> : vector<22x8xf32>
    %24 = tpu.matmul %21, %23, %cst_19 {dimension_numbers = #tpu.dot_dimension_numbers<[1], [0], [0], [1], [0, 0, 1, 1], [], []>} : vector<22x32xbf16>, vector<32x8xbf16>, vector<22x8xf32> -> vector<22x8xf32>
    %25 = arith.addf %16, %24 : vector<22x8xf32>
    %c0_20 = arith.constant 0 : index
    %c6 = arith.constant 6 : index
    %c0_21 = arith.constant 0 : index
    %26 = vector.load %arg1[%c0_20, %c6, %c0_21] : memref<1x36x32xf32, #tpu.memory_space<vmem>>, vector<1x22x32xf32>
    %27 = vector.shape_cast %26 : vector<1x22x32xf32> to vector<22x32xf32>
    %cst_22 = arith.constant 0.000000e+00 : f32
    %28 = vector.broadcast %cst_22 : f32 to vector<22x32xf32>
    %29 = arith.maximumf %27, %28 : vector<22x32xf32>
    %30 = arith.truncf %29 : vector<22x32xf32> to vector<22x32xbf16>
    %c3 = arith.constant 3 : index
    %c0_23 = arith.constant 0 : index
    %c0_24 = arith.constant 0 : index
    %31 = vector.load %arg2[%c3, %c0_23, %c0_24] : memref<9x32x8xbf16, #tpu.memory_space<vmem>>, vector<1x32x8xbf16>
    %32 = vector.shape_cast %31 : vector<1x32x8xbf16> to vector<32x8xbf16>
    %cst_25 = arith.constant dense<0.000000e+00> : vector<22x8xf32>
    %33 = tpu.matmul %30, %32, %cst_25 {dimension_numbers = #tpu.dot_dimension_numbers<[1], [0], [0], [1], [0, 0, 1, 1], [], []>} : vector<22x32xbf16>, vector<32x8xbf16>, vector<22x8xf32> -> vector<22x8xf32>
    %34 = arith.addf %25, %33 : vector<22x8xf32>
    %c0_26 = arith.constant 0 : index
    %c7 = arith.constant 7 : index
    %c0_27 = arith.constant 0 : index
    %35 = vector.load %arg1[%c0_26, %c7, %c0_27] : memref<1x36x32xf32, #tpu.memory_space<vmem>>, vector<1x22x32xf32>
    %36 = vector.shape_cast %35 : vector<1x22x32xf32> to vector<22x32xf32>
    %cst_28 = arith.constant 0.000000e+00 : f32
    %37 = vector.broadcast %cst_28 : f32 to vector<22x32xf32>
    %38 = arith.maximumf %36, %37 : vector<22x32xf32>
    %39 = arith.truncf %38 : vector<22x32xf32> to vector<22x32xbf16>
    %c4 = arith.constant 4 : index
    %c0_29 = arith.constant 0 : index
    %c0_30 = arith.constant 0 : index
    %40 = vector.load %arg2[%c4, %c0_29, %c0_30] : memref<9x32x8xbf16, #tpu.memory_space<vmem>>, vector<1x32x8xbf16>
    %41 = vector.shape_cast %40 : vector<1x32x8xbf16> to vector<32x8xbf16>
    %cst_31 = arith.constant dense<0.000000e+00> : vector<22x8xf32>
    %42 = tpu.matmul %39, %41, %cst_31 {dimension_numbers = #tpu.dot_dimension_numbers<[1], [0], [0], [1], [0, 0, 1, 1], [], []>} : vector<22x32xbf16>, vector<32x8xbf16>, vector<22x8xf32> -> vector<22x8xf32>
    %43 = arith.addf %34, %42 : vector<22x8xf32>
    %c0_32 = arith.constant 0 : index
    %c8 = arith.constant 8 : index
    %c0_33 = arith.constant 0 : index
    %44 = vector.load %arg1[%c0_32, %c8, %c0_33] : memref<1x36x32xf32, #tpu.memory_space<vmem>>, vector<1x22x32xf32>
    %45 = vector.shape_cast %44 : vector<1x22x32xf32> to vector<22x32xf32>
    %cst_34 = arith.constant 0.000000e+00 : f32
    %46 = vector.broadcast %cst_34 : f32 to vector<22x32xf32>
    %47 = arith.maximumf %45, %46 : vector<22x32xf32>
    %48 = arith.truncf %47 : vector<22x32xf32> to vector<22x32xbf16>
    %c5 = arith.constant 5 : index
    %c0_35 = arith.constant 0 : index
    %c0_36 = arith.constant 0 : index
    %49 = vector.load %arg2[%c5, %c0_35, %c0_36] : memref<9x32x8xbf16, #tpu.memory_space<vmem>>, vector<1x32x8xbf16>
    %50 = vector.shape_cast %49 : vector<1x32x8xbf16> to vector<32x8xbf16>
    %cst_37 = arith.constant dense<0.000000e+00> : vector<22x8xf32>
    %51 = tpu.matmul %48, %50, %cst_37 {dimension_numbers = #tpu.dot_dimension_numbers<[1], [0], [0], [1], [0, 0, 1, 1], [], []>} : vector<22x32xbf16>, vector<32x8xbf16>, vector<22x8xf32> -> vector<22x8xf32>
    %52 = arith.addf %43, %51 : vector<22x8xf32>
    %c0_38 = arith.constant 0 : index
    %c12 = arith.constant 12 : index
    %c0_39 = arith.constant 0 : index
    %53 = vector.load %arg1[%c0_38, %c12, %c0_39] : memref<1x36x32xf32, #tpu.memory_space<vmem>>, vector<1x22x32xf32>
    %54 = vector.shape_cast %53 : vector<1x22x32xf32> to vector<22x32xf32>
    %cst_40 = arith.constant 0.000000e+00 : f32
    %55 = vector.broadcast %cst_40 : f32 to vector<22x32xf32>
    %56 = arith.maximumf %54, %55 : vector<22x32xf32>
    %57 = arith.truncf %56 : vector<22x32xf32> to vector<22x32xbf16>
    %c6_41 = arith.constant 6 : index
    %c0_42 = arith.constant 0 : index
    %c0_43 = arith.constant 0 : index
    %58 = vector.load %arg2[%c6_41, %c0_42, %c0_43] : memref<9x32x8xbf16, #tpu.memory_space<vmem>>, vector<1x32x8xbf16>
    %59 = vector.shape_cast %58 : vector<1x32x8xbf16> to vector<32x8xbf16>
    %cst_44 = arith.constant dense<0.000000e+00> : vector<22x8xf32>
    %60 = tpu.matmul %57, %59, %cst_44 {dimension_numbers = #tpu.dot_dimension_numbers<[1], [0], [0], [1], [0, 0, 1, 1], [], []>} : vector<22x32xbf16>, vector<32x8xbf16>, vector<22x8xf32> -> vector<22x8xf32>
    %61 = arith.addf %52, %60 : vector<22x8xf32>
    %c0_45 = arith.constant 0 : index
    %c13 = arith.constant 13 : index
    %c0_46 = arith.constant 0 : index
    %62 = vector.load %arg1[%c0_45, %c13, %c0_46] : memref<1x36x32xf32, #tpu.memory_space<vmem>>, vector<1x22x32xf32>
    %63 = vector.shape_cast %62 : vector<1x22x32xf32> to vector<22x32xf32>
    %cst_47 = arith.constant 0.000000e+00 : f32
    %64 = vector.broadcast %cst_47 : f32 to vector<22x32xf32>
    %65 = arith.maximumf %63, %64 : vector<22x32xf32>
    %66 = arith.truncf %65 : vector<22x32xf32> to vector<22x32xbf16>
    %c7_48 = arith.constant 7 : index
    %c0_49 = arith.constant 0 : index
    %c0_50 = arith.constant 0 : index
    %67 = vector.load %arg2[%c7_48, %c0_49, %c0_50] : memref<9x32x8xbf16, #tpu.memory_space<vmem>>, vector<1x32x8xbf16>
    %68 = vector.shape_cast %67 : vector<1x32x8xbf16> to vector<32x8xbf16>
    %cst_51 = arith.constant dense<0.000000e+00> : vector<22x8xf32>
    %69 = tpu.matmul %66, %68, %cst_51 {dimension_numbers = #tpu.dot_dimension_numbers<[1], [0], [0], [1], [0, 0, 1, 1], [], []>} : vector<22x32xbf16>, vector<32x8xbf16>, vector<22x8xf32> -> vector<22x8xf32>
    %70 = arith.addf %61, %69 : vector<22x8xf32>
    %c0_52 = arith.constant 0 : index
    %c14 = arith.constant 14 : index
    %c0_53 = arith.constant 0 : index
    %71 = vector.load %arg1[%c0_52, %c14, %c0_53] : memref<1x36x32xf32, #tpu.memory_space<vmem>>, vector<1x22x32xf32>
    %72 = vector.shape_cast %71 : vector<1x22x32xf32> to vector<22x32xf32>
    %cst_54 = arith.constant 0.000000e+00 : f32
    %73 = vector.broadcast %cst_54 : f32 to vector<22x32xf32>
    %74 = arith.maximumf %72, %73 : vector<22x32xf32>
    %75 = arith.truncf %74 : vector<22x32xf32> to vector<22x32xbf16>
    %c8_55 = arith.constant 8 : index
    %c0_56 = arith.constant 0 : index
    %c0_57 = arith.constant 0 : index
    %76 = vector.load %arg2[%c8_55, %c0_56, %c0_57] : memref<9x32x8xbf16, #tpu.memory_space<vmem>>, vector<1x32x8xbf16>
    %77 = vector.shape_cast %76 : vector<1x32x8xbf16> to vector<32x8xbf16>
    %cst_58 = arith.constant dense<0.000000e+00> : vector<22x8xf32>
    %78 = tpu.matmul %75, %77, %cst_58 {dimension_numbers = #tpu.dot_dimension_numbers<[1], [0], [0], [1], [0, 0, 1, 1], [], []>} : vector<22x32xbf16>, vector<32x8xbf16>, vector<22x8xf32> -> vector<22x8xf32>
    %79 = arith.addf %70, %78 : vector<22x8xf32>
    %c0_59 = arith.constant 0 : index
    %c0_60 = arith.constant 0 : index
    %80 = vector.load %arg3[%c0_59, %c0_60] : memref<1x8xf32, #tpu.memory_space<vmem>>, vector<1x8xf32>
    %81 = vector.broadcast %80 : vector<1x8xf32> to vector<22x8xf32>
    %82 = arith.addf %79, %81 : vector<22x8xf32>
    %cst_61 = arith.constant 0.000000e+00 : f32
    %83 = vector.broadcast %cst_61 : f32 to vector<22x8xf32>
    %84 = arith.maximumf %82, %83 : vector<22x8xf32>
    %85 = arith.truncf %84 : vector<22x8xf32> to vector<22x8xbf16>
    %c0_62 = arith.constant 0 : index
    %c0_63 = arith.constant 0 : index
    %86 = vector.load %arg4[%c0_62, %c0_63] : memref<8x32xbf16, #tpu.memory_space<vmem>>, vector<8x32xbf16>
    %cst_64 = arith.constant dense<0.000000e+00> : vector<22x32xf32>
    %87 = tpu.matmul %85, %86, %cst_64 {dimension_numbers = #tpu.dot_dimension_numbers<[1], [0], [0], [1], [0, 0, 1, 1], [], []>} : vector<22x8xbf16>, vector<8x32xbf16>, vector<22x32xf32> -> vector<22x32xf32>
    %c0_65 = arith.constant 0 : index
    %c7_66 = arith.constant 7 : index
    %c0_67 = arith.constant 0 : index
    %88 = vector.load %arg1[%c0_65, %c7_66, %c0_67] : memref<1x36x32xf32, #tpu.memory_space<vmem>>, vector<1x22x32xf32>
    %89 = vector.shape_cast %88 : vector<1x22x32xf32> to vector<22x32xf32>
    %c0_68 = arith.constant 0 : index
    %c0_69 = arith.constant 0 : index
    %90 = vector.load %arg5[%c0_68, %c0_69] : memref<1x32xf32, #tpu.memory_space<vmem>>, vector<1x32xf32>
    %91 = vector.broadcast %90 : vector<1x32xf32> to vector<22x32xf32>
    %92 = arith.addf %87, %91 : vector<22x32xf32>
    %93 = arith.addf %92, %89 : vector<22x32xf32>
    %c0_70 = arith.constant 0 : index
    %c0_71 = arith.constant 0 : index
    %c0_72 = arith.constant 0 : index
    %94 = vector.load %arg6[%c0_70, %c0_71, %c0_72] : memref<1x22x32xf32, #tpu.memory_space<vmem>>, vector<1x22x32xf32>
    %95 = vector.shape_cast %94 : vector<1x22x32xf32> to vector<22x32xf32>
    %96 = vector.shape_cast %93 : vector<22x32xf32> to vector<1x22x32xf32>
    tpu.vector_store %arg6[%c0_70, %c0_71, %c0_72], %96 {strides = array<i32>} : memref<1x22x32xf32, #tpu.memory_space<vmem>>, vector<1x22x32xf32>,
    return
  }
  func.func @transform_0(%arg0: i32) -> (i32, i32, i32) {
    %c0_i32 = arith.constant 0 : i32
    %c0_i32_0 = arith.constant 0 : i32
    %c0_i32_1 = arith.constant 0 : i32
    return %arg0, %c0_i32, %c0_i32_0 : i32, i32, i32
  }
  func.func @transform_1(%arg0: i32) -> (i32, i32, i32) {
    %c0_i32 = arith.constant 0 : i32
    %c0_i32_0 = arith.constant 0 : i32
    %c0_i32_1 = arith.constant 0 : i32
    %c0_i32_2 = arith.constant 0 : i32
    return %c0_i32, %c0_i32_0, %c0_i32_1 : i32, i32, i32
  }
  func.func @transform_2(%arg0: i32) -> (i32, i32) {
    %c0_i32 = arith.constant 0 : i32
    %c0_i32_0 = arith.constant 0 : i32
    %c0_i32_1 = arith.constant 0 : i32
    return %c0_i32, %c0_i32_0 : i32, i32
  }
  func.func @transform_3(%arg0: i32) -> (i32, i32) {
    %c0_i32 = arith.constant 0 : i32
    %c0_i32_0 = arith.constant 0 : i32
    %c0_i32_1 = arith.constant 0 : i32
    return %c0_i32, %c0_i32_0 : i32, i32
  }
  func.func @transform_4(%arg0: i32) -> (i32, i32) {
    %c0_i32 = arith.constant 0 : i32
    %c0_i32_0 = arith.constant 0 : i32
    %c0_i32_1 = arith.constant 0 : i32
    return %c0_i32, %c0_i32_0 : i32, i32
  }
  func.func @transform_5(%arg0: i32) -> (i32, i32, i32) {
    %c0_i32 = arith.constant 0 : i32
    %c0_i32_0 = arith.constant 0 : i32
    %c0_i32_1 = arith.constant 0 : i32
    return %arg0, %c0_i32, %c0_i32_0 : i32, i32, i32
  }
}

</mosaic_0001>

<bundles_post_ra>
// kernel: encoder_forward.5
= control target key start
LH: loop header
LB: loop body
LE: loop exit
PB: predicated region body
PF: predicated region fallthrough
CT: control target
= control target key end

     0   :  { %s928_s12 = smov 0   ;;  %s1108_s0 = inlined_call_operand.vmem [shape: f32[2,81,12], index: 0, kind: input, shape index: {}]   ;;  %s1109_s1 = inlined_call_operand.vmem [shape: bf16[4,12,16], index: 1, kind: input, shape index: {}]   ;;  %s1110_s2 = inlined_call_operand.vmem [shape: f32[1,16], index: 2, kind: input, shape index: {}]   ;;  %s1111_s3 = inlined_call_operand.vmem [shape: f32[2,71,16], index: 3, kind: output, shape index: {}]  }
   0x1 LB: > { %s730_s13 = sadd.s32 4294967295, %s904_s12   ;;  %p734_p0 = scmp.ge.s32.totalorder %s904_s12, 1  ;;  %s904_s12 = sphi %s928_s12, %s13_s12  }
   0x2   : > { %p137_p1 = scmp.lt.s32.totalorder %s904_s12, 3 }
   0x4   : > { %p138_p2 = pnand %p734_p0, %p137_p1 }
   0x5   : > { %vm226_vm0 = vcmask (!%p138_p2), 1045504   ;;  %v906_v0 = vmov (!%p138_p2), 0.0   ;;  %v894_v1 = vld [vmem:[%s1109_s1 + $0x8] sm:$0x3f] (!%p138_p2)   ;;  %v895_v2 = vld [vmem:[%s1109_s1] sm:$0x3f] (!%p138_p2)  }
   0x6   : > { %141 = sbr.rel (%p138_p2) target bundleno = 313 (0x139), region = 32  ;;  %794 = vmatprep.subr.bf16.mxu0 (!%p138_p2), %v906_v0  ;;  %816 = vmatprep.subr.bf16.mxu1 (!%p138_p2), %v906_v0  ;;  %p161_p3 = scmp.lt.s32.totalorder (!%p138_p2), %s730_s13, 1  ;;  %v228_v3 = vsel (!%p138_p2), %vm226_vm0, %v894_v1, 0  ;;  %vm907_vm1 = vmmov (!%p138_p2), 0   ;;  %v323_v4 = vsel (!%p138_p2), %vm226_vm0, %v895_v2, 0  ;;  %vm210_vm2 = vcmask (!%p138_p2), 97280  }
   0x7   : > { %796 = vmatprep.mubr.msk.bf16.mxu0 (!%p138_p2), %vm907_vm1, %v906_v0  ;;  %818 = vmatprep.mubr.msk.bf16.mxu1 (!%p138_p2), %vm907_vm1, %v906_v0  ;;  %v896_v5 = vld [vmem:[%s1109_s1 + $0x10] sm:$0x3f] (!%p138_p2)   ;;  %v897_v6 = vld [vmem:[%s1109_s1 + $0x18] sm:$0x3f] (!%p138_p2)   ;;  %vm664_vm3 = vcmask (!%p138_p2), 130048   ;;  %vm673_vm4 = vcmask (!%p138_p2), 129024  }
   0x8   : > { %795 = vmatpush3.bf16.msra.mxu0 (!%p138_p2), %v228_v3  ;;  %817 = vmatpush3.bf16.msra.mxu1 (!%p138_p2), %v323_v4  ;;  %v435_v12 = vsel (!%p138_p2), %vm226_vm0, %v896_v5, 0  ;;  %v556_v14 = vsel (!%p138_p2), %vm226_vm0, %v897_v6, 0 }
   0x9   : > { %838 = vmatprep.subr.bf16.mxu0 (!%p138_p2), %v906_v0  ;;  %860 = vmatprep.subr.bf16.mxu1 (!%p138_p2), %v906_v0 }
   0xd   : > { %s1113_s13 = smov (!%p161_p3, %s730_s13), 1 }
   0xe   : > { %s882_s18 = smul.u32 88, %s1113_s13 }
   0xf   : > { %s883_s26 = smul.u32 72, %s1113_s13 }
  0x10   : > { %s964_s25 = scalar_lea.vmem %s1108_s0, %s882_s18 }
  0x11   : > { %v188_v7 = vld [vmem:[%s964_s25 + $0x1] sm:$0xff]  ;;  %v189_v8 = vld [vmem:[%s964_s25 + $0x9] sm:$0xff]  ;;  %v190_v15 = vld [vmem:[%s964_s25 + $0x11] sm:$0xff]  ;;  %s1073_s4 = scalar_lea.vmem %s1111_s3, %s883_s26 }
  0x12   : > { %v172_v9 = vld [vmem:[%s964_s25] sm:$0xff]  ;;  %v197_v10 = vpack.c.bf16 %v189_v8, %v188_v7  ;;  %v173_v11 = vld [vmem:[%s964_s25 + $0x8] sm:$0xff]  ;;  %v174_v17 = vld [vmem:[%s964_s25 + $0x10] sm:$0xff]  ;;  %v406_v39 = vpack.c.bf16 %v190_v15, %v189_v8 }
  0x13   : > { %v181_v13 = vpack.c.bf16 %v173_v11, %v172_v9  ;;  %v191_v16 = vld [vmem:[%s964_s25 + $0x19] sm:$0xff]  ;;  %v192_v21 = vld [vmem:[%s964_s25 + $0x21] sm:$0xff]  ;;  %v193_v22 = vld [vmem:[%s964_s25 + $0x29] sm:$0xff] }
  0x14   : > { %797 = vmatmul.mubr.msk.bf16.vlgmr.msra.gmra.mrb[0].mxu0 %vm210_vm2, %v197_v10  ;;  %v175_v18 = vld [vmem:[%s964_s25 + $0x18] sm:$0xff]  ;;  %v198_v19 = vpack.c.bf16 %v191_v16, %v190_v15  ;;  %v176_v23 = vld [vmem:[%s964_s25 + $0x20] sm:$0xff]  ;;  %v177_v24 = vld [vmem:[%s964_s25 + $0x28] sm:$0xff]  ;;  %v199_v25 = vpack.c.bf16 %v193_v22, %v192_v21  ;;  %v407_v43 = vpack.c.bf16 %v192_v21, %v191_v16 }
  0x15   : > { %819 = vmatmul.mubr.msk.bf16.vlgmr.msra.gmra.mrb[0].mxu1 %vm210_vm2, %v181_v13  ;;  %839 = vmatpush3.bf16.msra.mxu0 %v435_v12  ;;  %v182_v20 = vpack.c.bf16 %v175_v18, %v174_v17  ;;  %v183_v26 = vpack.c.bf16 %v177_v24, %v176_v23  ;;  %v194_v27 = vld [vmem:[%s964_s25 + $0x31] sm:$0xff]  ;;  %v195_v28 = vld [vmem:[%s964_s25 + $0x39] sm:$0xff]  ;;  %v196_v33 = vld [vmem:[%s964_s25 + $0x41] sm:$0x7f] }
  0x16   : > { %861 = vmatpush3.bf16.msra.mxu1 %v556_v14  ;;  %800 = vmatprep.mubr.msk.bf16.mxu0 %vm907_vm1, %v906_v0  ;;  %v178_v29 = vld [vmem:[%s964_s25 + $0x30] sm:$0xff]  ;;  %v179_v30 = vld [vmem:[%s964_s25 + $0x38] sm:$0xff]  ;;  %v200_v31 = vpack.c.bf16 %v195_v28, %v194_v27  ;;  %v180_v34 = vld [vmem:[%s964_s25 + $0x40] sm:$0x7f]  ;;  %v201_v35 = vpack.c.bf16 %v196_v33, %v196_v33  ;;  %v408_v47 = vpack.c.bf16 %v194_v27, %v193_v22 }
  0x17   : > { %822 = vmatprep.mubr.msk.bf16.mxu1 %vm907_vm1, %v906_v0  ;;  %v184_v32 = vpack.c.bf16 %v179_v30, %v178_v29  ;;  %v185_v36 = vpack.c.bf16 %v180_v34, %v180_v34  ;;  %v518_v37 = vld [vmem:[%s964_s25 + $0xa] sm:$0xff]  ;;  %v519_v38 = vld [vmem:[%s964_s25 + $0x12] sm:$0xff]  ;;  %v520_v41 = vld [vmem:[%s964_s25 + $0x1a] sm:$0xff] }
  0x18   : > { %v527_v40 = vpack.c.bf16 %v519_v38, %v518_v37  ;;  %v521_v42 = vld [vmem:[%s964_s25 + $0x22] sm:$0xff]  ;;  %v522_v45 = vld [vmem:[%s964_s25 + $0x2a] sm:$0xff]  ;;  %v523_v46 = vld [vmem:[%s964_s25 + $0x32] sm:$0xff] }
  0x19   : > { %v528_v44 = vpack.c.bf16 %v521_v42, %v520_v41  ;;  %v529_v48 = vpack.c.bf16 %v523_v46, %v522_v45  ;;  %v404_v49 = vld [vmem:[%s964_s25 + $0x41] sm:$0xff]  ;;  %v405_v54 = vld [vmem:[%s964_s25 + $0x49] sm:$0x7f] }
  0x1a   : > { %v524_v50 = vld [vmem:[%s964_s25 + $0x3a] sm:$0xff]  ;;  %v525_v51 = vld [vmem:[%s964_s25 + $0x42] sm:$0xff]  ;;  %v409_v52 = vpack.c.bf16 %v404_v49, %v195_v28  ;;  %v526_v55 = vld [vmem:[%s964_s25 + $0x4a] sm:$0x7f]  ;;  %v410_v56 = vpack.c.bf16 %v405_v54, %v405_v54 }
  0x1b   : > { %v530_v53 = vpack.c.bf16 %v525_v51, %v524_v50  ;;  %v531_v57 = vpack.c.bf16 %v526_v55, %v526_v55 }
  0x1c   : > { %801 = vmatmul.mubr.msk.bf16.gmra.mrb[4].mxu0 %vm210_vm2, %v198_v19 }
  0x1d   : > { %823 = vmatmul.mubr.msk.bf16.gmra.mrb[4].mxu1 %vm210_vm2, %v182_v20  ;;  %804 = vmatprep.mubr.msk.bf16.mxu0 %vm907_vm1, %v906_v0 }
  0x1e   : > { %826 = vmatprep.mubr.msk.bf16.mxu1 %vm907_vm1, %v906_v0 }
  0x24   : > { %805 = vmatmul.mubr.msk.bf16.gmra.mrb[8].mxu0 %vm210_vm2, %v199_v25 }
  0x25   : > { %827 = vmatmul.mubr.msk.bf16.gmra.mrb[8].mxu1 %vm210_vm2, %v183_v26  ;;  %808 = vmatprep.mubr.msk.bf16.mxu0 %vm907_vm1, %v906_v0 }
  0x26   : > { %830 = vmatprep.mubr.msk.bf16.mxu1 %vm907_vm1, %v906_v0 }
  0x2c   : > { %809 = vmatmul.mubr.msk.bf16.gmra.mrb[12].mxu0 %vm210_vm2, %v200_v31 }
  0x2d   : > { %831 = vmatmul.mubr.msk.bf16.gmra.mrb[12].mxu1 %vm210_vm2, %v184_v32  ;;  %812 = vmatprep.mubr.msk.bf16.mxu0 %vm907_vm1, %v906_v0 }
  0x2e   : > { %834 = vmatprep.mubr.msk.bf16.mxu1 %vm907_vm1, %v906_v0 }
  0x34   : > { %813 = vmatmul.mubr.msk.bf16.gmra.mrb[16].mxu0 %vm210_vm2, %v201_v35 }
  0x35   : > { %835 = vmatmul.mubr.msk.bf16.gmra.mrb[16].mxu1 %vm210_vm2, %v185_v36  ;;  %840 = vmatprep.mubr.msk.bf16.mxu0 %vm907_vm1, %v906_v0 }
  0x36   : > { %862 = vmatprep.mubr.msk.bf16.mxu1 %vm907_vm1, %v906_v0 }
  0x3c   : > { %841 = vmatmul.mubr.msk.bf16.vlgmr.msra.gmra.mrb[20].mxu0 %vm210_vm2, %v406_v39 }
  0x3d   : > { %863 = vmatmul.mubr.msk.bf16.vlgmr.msra.gmra.mrb[20].mxu1 %vm210_vm2, %v527_v40  ;;  %844 = vmatprep.mubr.msk.bf16.mxu0 %vm907_vm1, %v906_v0 }
  0x3e   : > { %866 = vmatprep.mubr.msk.bf16.mxu1 %vm907_vm1, %v906_v0 }
  0x44   : > { %845 = vmatmul.mubr.msk.bf16.gmra.mrb[24].mxu0 %vm210_vm2, %v407_v43 }
  0x45   : > { %867 = vmatmul.mubr.msk.bf16.gmra.mrb[24].mxu1 %vm210_vm2, %v528_v44  ;;  %848 = vmatprep.mubr.msk.bf16.mxu0 %vm907_vm1, %v906_v0 }
  0x46   : > { %870 = vmatprep.mubr.msk.bf16.mxu1 %vm907_vm1, %v906_v0 }
  0x4c   : > { %849 = vmatmul.mubr.msk.bf16.gmra.mrb[28].mxu0 %vm210_vm2, %v408_v47  ;;  %v1067_v47 = vld [vmem:[%s1110_s2] ss:$0 sm:$0xff] }
  0x4d   : > { %871 = vmatmul.mubr.msk.bf16.gmra.mrb[28].mxu1 %vm210_vm2, %v529_v48  ;;  %852 = vmatprep.mubr.msk.bf16.mxu0 %vm907_vm1, %v906_v0 }
  0x4e   : > { %874 = vmatprep.mubr.msk.bf16.mxu1 %vm907_vm1, %v906_v0 }
  0x54   : > { %853 = vmatmul.mubr.msk.bf16.gmra.mrb[32].mxu0 %vm210_vm2, %v409_v52 }
  0x55   : > { %875 = vmatmul.mubr.msk.bf16.gmra.mrb[32].mxu1 %vm210_vm2, %v530_v53  ;;  %856 = vmatprep.mubr.msk.bf16.mxu0 %vm907_vm1, %v906_v0 }
  0x56   : > { %878 = vmatprep.mubr.msk.bf16.mxu1 %vm907_vm1, %v906_v0 }
  0x5c   : > { %857 = vmatmul.mubr.msk.bf16.gmra.mrb[36].mxu0 %vm210_vm2, %v410_v56 }
  0x5d   : > { %879 = vmatmul.mubr.msk.bf16.gmra.mrb[36].mxu1 %vm210_vm2, %v531_v57 }
  0xe7   : > { %v264_v58 = vpop.f32.mrb[0].mxu0 }
  0xe8   : > { %v359_v59 = vpop.f32.mrb[0].mxu1  ;;  %v798_v60 = vpop.f32.mrb[1].mxu0 }
  0xe9   : > { %v360_v61 = vadd.f32 %v359_v59, %v264_v58  ;;  %v820_v62 = vpop.f32.mrb[1].mxu1  ;;  %v267_v63 = vpop.f32.mrb[2].mxu0 }
  0xea   : > { %v362_v1 = vpop.f32.mrb[2].mxu1  ;;  %v799_v2 = vpop.f32.mrb[3].mxu0 }
  0xeb   : > { %v363_v3 = vadd.f32 %v362_v1, %v267_v63  ;;  %v821_v4 = vpop.f32.mrb[3].mxu1 }
  0xef   : > { %v272_v5 = vpop.f32.mrb[4].mxu0 }
  0xf0   : > { %v367_v6 = vpop.f32.mrb[4].mxu1  ;;  %v802_v0 = vpop.f32.mrb[5].mxu0 }
  0xf1   : > { %v368_v7 = vadd.f32 %v367_v6, %v272_v5  ;;  %v824_v8 = vpop.f32.mrb[5].mxu1  ;;  %v275_v9 = vpop.f32.mrb[6].mxu0 }
  0xf2   : > { %v370_v10 = vpop.f32.mrb[6].mxu1  ;;  %v803_v11 = vpop.f32.mrb[7].mxu0 }
  0xf3   : > { %v371_v12 = vadd.f32 %v370_v10, %v275_v9  ;;  %v825_v13 = vpop.f32.mrb[7].mxu1 }
  0xf7   : > { %v280_v14 = vpop.f32.mrb[8].mxu0 }
  0xf8   : > { %v375_v15 = vpop.f32.mrb[8].mxu1  ;;  %v806_v16 = vpop.f32.mrb[9].mxu0 }
  0xf9   : > { %v1053_v17 = vadd.f32 %v375_v15, %v280_v14  ;;  %v828_v18 = vpop.f32.mrb[9].mxu1  ;;  %v283_v19 = vpop.f32.mrb[10].mxu0 }
  0xfa   : > { %v378_v20 = vpop.f32.mrb[10].mxu1  ;;  %v807_v21 = vpop.f32.mrb[11].mxu0 }
  0xfb   : > { %v1055_v22 = vadd.f32 %v378_v20, %v283_v19  ;;  %v829_v23 = vpop.f32.mrb[11].mxu1 }
  0xff   : > { %v288_v24 = vpop.f32.mrb[12].mxu0 }
 0x100   : > { %v383_v25 = vpop.f32.mrb[12].mxu1  ;;  %v810_v26 = vpop.f32.mrb[13].mxu0 }
 0x101   : > { %v1057_v27 = vadd.f32 %v383_v25, %v288_v24  ;;  %v832_v28 = vpop.f32.mrb[13].mxu1  ;;  %v291_v29 = vpop.f32.mrb[14].mxu0 }
 0x102   : > { %v386_v30 = vpop.f32.mrb[14].mxu1  ;;  %v811_v31 = vpop.f32.mrb[15].mxu0 }
 0x103   : > { %v1059_v32 = vadd.f32 %v386_v30, %v291_v29  ;;  %v833_v33 = vpop.f32.mrb[15].mxu1 }
 0x107   : > { %v296_v34 = vpop.f32.mrb[16].mxu0 }
 0x108   : > { %v391_v35 = vpop.f32.mrb[16].mxu1  ;;  %v814_v36 = vpop.f32.mrb[17].mxu0 }
 0x109   : > { %v1061_v37 = vadd.f32 %v391_v35, %v296_v34  ;;  %v836_v38 = vpop.f32.mrb[17].mxu1  ;;  %v299_v39 = vpop.f32.mrb[18].mxu0 }
 0x10a   : > { %v394_v40 = vpop.f32.mrb[18].mxu1  ;;  %v815_v41 = vpop.f32.mrb[19].mxu0 }
 0x10b   : > { %v837_v42 = vpop.f32.mrb[19].mxu1 }
 0x10f   : > { %v471_v43 = vpop.f32.mrb[20].mxu0 }
 0x110   : > { %v509_v44 = vadd.f32 %v471_v43, %v360_v61  ;;  %v592_v45 = vpop.f32.mrb[20].mxu1  ;;  %v842_v46 = vpop.f32.mrb[21].mxu0 }
 0x111   : > { %v864_v48 = vpop.f32.mrb[21].mxu1  ;;  %v474_v49 = vpop.f32.mrb[22].mxu0 }
 0x112   : > { %v630_v50 = vadd.f32 %v592_v45, %v509_v44  ;;  %v510_v51 = vadd.f32 %v474_v49, %v363_v3  ;;  %v595_v52 = vpop.f32.mrb[22].mxu1  ;;  %v843_v53 = vpop.f32.mrb[23].mxu0 }
 0x113   : > { %v865_v54 = vpop.f32.mrb[23].mxu1 }
 0x114   : > { %v646_v55 = vadd.f32 %v1067_v47, %v630_v50  ;;  %v631_v56 = vadd.f32 %v595_v52, %v510_v51 }
 0x116   : > { %v655_v57 = vmax.f32 %v646_v55, 0.0  ;;  %v647_v58 = vadd.f32 %v1067_v47, %v631_v56 }
 0x117   : > { %v479_v59 = vpop.f32.mrb[24].mxu0 }
 0x118   : > { %665 = vst.msk [vmem:[%s1073_s4] sm:$0xff] %vm664_vm3, %v655_v57  ;;  %v656_v60 = vmax.f32 %v647_v58, 0.0  ;;  %v511_v61 = vadd.f32 %v479_v59, %v368_v7  ;;  %v600_v62 = vpop.f32.mrb[24].mxu1  ;;  %v846_v63 = vpop.f32.mrb[25].mxu0 }
 0x119   : > { %v868_v1 = vpop.f32.mrb[25].mxu1  ;;  %v482_v2 = vpop.f32.mrb[26].mxu0 }
 0x11a   : > { %666 = vst.msk [vmem:[%s1073_s4 + $0x8] sm:$0xff] %vm664_vm3, %v656_v60  ;;  %v632_v3 = vadd.f32 %v600_v62, %v511_v61  ;;  %v512_v4 = vadd.f32 %v482_v2, %v371_v12  ;;  %v603_v5 = vpop.f32.mrb[26].mxu1  ;;  %v847_v6 = vpop.f32.mrb[27].mxu0 }
 0x11b   : > { %v869_v0 = vpop.f32.mrb[27].mxu1 }
 0x11c   : > { %v648_v8 = vadd.f32 %v1067_v47, %v632_v3  ;;  %v633_v9 = vadd.f32 %v603_v5, %v512_v4 }
 0x11e   : > { %v657_v10 = vmax.f32 %v648_v8, 0.0  ;;  %v649_v11 = vadd.f32 %v1067_v47, %v633_v9 }
 0x11f   : > { %v487_v7 = vpop.f32.mrb[28].mxu0 }
 0x120   : > { %667 = vst.msk [vmem:[%s1073_s4 + $0x10] sm:$0xff] %vm664_vm3, %v657_v10  ;;  %v658_v13 = vmax.f32 %v649_v11, 0.0  ;;  %v513_v14 = vadd.f32 %v487_v7, %v1053_v17  ;;  %v608_v15 = vpop.f32.mrb[28].mxu1  ;;  %v850_v16 = vpop.f32.mrb[29].mxu0 }
 0x121   : > { %v872_v12 = vpop.f32.mrb[29].mxu1  ;;  %v490_v18 = vpop.f32.mrb[30].mxu0 }
 0x122   : > { %668 = vst.msk [vmem:[%s1073_s4 + $0x18] sm:$0xff] %vm664_vm3, %v658_v13  ;;  %v634_v19 = vadd.f32 %v608_v15, %v513_v14  ;;  %v514_v20 = vadd.f32 %v490_v18, %v1055_v22  ;;  %v611_v21 = vpop.f32.mrb[30].mxu1  ;;  %v851_v23 = vpop.f32.mrb[31].mxu0 }
 0x123   : > { %v873_v24 = vpop.f32.mrb[31].mxu1 }
 0x124   : > { %v650_v25 = vadd.f32 %v1067_v47, %v634_v19  ;;  %v635_v26 = vadd.f32 %v611_v21, %v514_v20 }
 0x126   : > { %v659_v28 = vmax.f32 %v650_v25, 0.0  ;;  %v651_v17 = vadd.f32 %v1067_v47, %v635_v26 }
 0x127   : > { %v495_v29 = vpop.f32.mrb[32].mxu0 }
 0x128   : > { %669 = vst.msk [vmem:[%s1073_s4 + $0x20] sm:$0xff] %vm664_vm3, %v659_v28  ;;  %v660_v30 = vmax.f32 %v651_v17, 0.0  ;;  %v515_v31 = vadd.f32 %v495_v29, %v1057_v27  ;;  %v616_v33 = vpop.f32.mrb[32].mxu1  ;;  %v854_v34 = vpop.f32.mrb[33].mxu0 }
 0x129   : > { %v876_v22 = vpop.f32.mrb[33].mxu1  ;;  %v498_v35 = vpop.f32.mrb[34].mxu0 }
 0x12a   : > { %670 = vst.msk [vmem:[%s1073_s4 + $0x28] sm:$0xff] %vm664_vm3, %v660_v30  ;;  %v636_v36 = vadd.f32 %v616_v33, %v515_v31  ;;  %v516_v38 = vadd.f32 %v498_v35, %v1059_v32  ;;  %v619_v39 = vpop.f32.mrb[34].mxu1  ;;  %v855_v40 = vpop.f32.mrb[35].mxu0 }
 0x12b   : > { %v877_v41 = vpop.f32.mrb[35].mxu1 }
 0x12c   : > { %v652_v42 = vadd.f32 %v1067_v47, %v636_v36  ;;  %v637_v43 = vadd.f32 %v619_v39, %v516_v38 }
 0x12e   : > { %v661_v44 = vmax.f32 %v652_v42, 0.0  ;;  %v653_v27 = vadd.f32 %v1067_v47, %v637_v43 }
 0x12f   : > { %v503_v45 = vpop.f32.mrb[36].mxu0 }
 0x130   : > { %671 = vst.msk [vmem:[%s1073_s4 + $0x30] sm:$0xff] %vm664_vm3, %v661_v44  ;;  %v662_v46 = vmax.f32 %v653_v27, 0.0  ;;  %v517_v48 = vadd.f32 %v503_v45, %v1061_v37  ;;  %v624_v49 = vpop.f32.mrb[36].mxu1  ;;  %v858_v50 = vpop.f32.mrb[37].mxu0 }
 0x131   : > { %v880_v32 = vpop.f32.mrb[37].mxu1  ;;  %v506_v51 = vpop.f32.mrb[38].mxu0 }
 0x132   : > { %672 = vst.msk [vmem:[%s1073_s4 + $0x38] sm:$0xff] %vm664_vm3, %v662_v46  ;;  %v638_v52 = vadd.f32 %v624_v49, %v517_v48  ;;  %v627_v53 = vpop.f32.mrb[38].mxu1  ;;  %v859_v54 = vpop.f32.mrb[39].mxu0 }
 0x133   : > { %v881_v55 = vpop.f32.mrb[39].mxu1 }
 0x134   : > { %v654_v56 = vadd.f32 %v1067_v47, %v638_v52 }
 0x136   : > { %v663_v57 = vmax.f32 %v654_v56, 0.0 }
 0x138   : > { %674 = vst.msk [vmem:[%s1073_s4 + $0x40] sm:$0x7f] %vm673_vm4, %v663_v57 }
 0x139 PF: > { %s13_s12 = sadd.s32 1, %s904_s12  }
 0x13a   : > { %p10_p4 = scmp.ge.s32.totalorder %s13_s12, 4  }
 0x13c   :  { %12 = sbr.rel (!%p10_p4) target bundleno = 1 (0x1), region = 65 }

// kernel: encoder_forward.6
= control target key start
LH: loop header
LB: loop body
LE: loop exit
PB: predicated region body
PF: predicated region fallthrough
CT: control target
= control target key end

     0   :  { %s804_s12 = smov 0   ;;  %s898_s0 = inlined_call_operand.vmem [shape: f32[2,25,64], index: 0, kind: input, shape index: {}]   ;;  %s899_s1 = inlined_call_operand.vmem [shape: bf16[4,64,32], index: 1, kind: input, shape index: {}]   ;;  %s900_s2 = inlined_call_operand.vmem [shape: f32[1,32], index: 2, kind: input, shape index: {}]   ;;  %s901_s3 = inlined_call_operand.vmem [shape: f32[2,19,32], index: 3, kind: output, shape index: {}]  }
   0x1 LB: > { %s619_s13 = sadd.s32 4294967295, %s782_s12   ;;  %p623_p0 = scmp.ge.s32.totalorder %s782_s12, 1  ;;  %s782_s12 = sphi %s804_s12, %s13_s12  }
   0x2   : > { %p137_p1 = scmp.lt.s32.totalorder %s782_s12, 3 }
   0x4   : > { %p138_p2 = pnand %p623_p0, %p137_p1 }
   0x5   : > { %v760_v0 = vld [vmem:[%s899_s1 + $0x20] sm:$0xff] (!%p138_p2)   ;;  %p161_p3 = scmp.lt.s32.totalorder (!%p138_p2), %s619_s13, 1  ;;  %v762_v2 = vld [vmem:[%s899_s1 + $0x28] sm:$0xff] (!%p138_p2)   ;;  %v764_v4 = vld [vmem:[%s899_s1 + $0x30] sm:$0xff] (!%p138_p2)   ;;  %vm223_vm0 = vcmask (!%p138_p2), 523264   ;;  %vm562_vm1 = vcmask (!%p138_p2), 256000  }
   0x6   : > { %141 = sbr.rel (%p138_p2) target bundleno = 262 (0x106), region = 32  ;;  %v761_v1 = vld [vmem:[%s899_s1] sm:$0xff] (!%p138_p2)   ;;  %703 = vmatprep.subr.bf16.mxu0 (!%p138_p2), %v760_v0  ;;  %v763_v3 = vld [vmem:[%s899_s1 + $0x8] sm:$0xff] (!%p138_p2)   ;;  %v765_v5 = vld [vmem:[%s899_s1 + $0x10] sm:$0xff] (!%p138_p2)   ;;  %vm559_vm2 = vcmask (!%p138_p2), 261120  }
   0x7   : > { %715 = vmatprep.subr.bf16.mxu1 (!%p138_p2), %v761_v1  ;;  %704 = vmatpush3.bf16.msra.mxu0 (!%p138_p2), %v760_v0  ;;  %v766_v6 = vld [vmem:[%s899_s1 + $0x38] sm:$0xff] (!%p138_p2)   ;;  %v768_v16 = vld [vmem:[%s899_s1 + $0x40] sm:$0xff] (!%p138_p2)   ;;  %v770_v20 = vld [vmem:[%s899_s1 + $0x48] sm:$0xff] (!%p138_p2)  }
   0x8   : > { %716 = vmatpush3.bf16.msra.mxu1 (!%p138_p2), %v761_v1  ;;  %705 = vmatprep.subr.bf16.mxu0 (!%p138_p2), %v762_v2  ;;  %v767_v10 = vld [vmem:[%s899_s1 + $0x18] sm:$0xff] (!%p138_p2)   ;;  %v769_v17 = vld [vmem:[%s899_s1 + $0x60] sm:$0xff] (!%p138_p2)   ;;  %v771_v21 = vld [vmem:[%s899_s1 + $0x68] sm:$0xff] (!%p138_p2)  }
   0x9   : > { %717 = vmatprep.subr.bf16.mxu1 (!%p138_p2), %v763_v3  ;;  %v772_v27 = vld [vmem:[%s899_s1 + $0x50] sm:$0xff] (!%p138_p2)   ;;  %v774_v30 = vld [vmem:[%s899_s1 + $0x58] sm:$0xff] (!%p138_p2)   ;;  %v675_v51 = vld [vmem:[%s900_s2] ss:$0 sm:$0xff] (!%p138_p2) }
   0xa   : > { %v773_v29 = vld [vmem:[%s899_s1 + $0x70] sm:$0xff] (!%p138_p2)   ;;  %v775_v31 = vld [vmem:[%s899_s1 + $0x78] sm:$0xff] (!%p138_p2)  }
   0xb   : > { %706 = vmatpush3.bf16.msra.mxu0 (!%p138_p2), %v762_v2 }
   0xc   : > { %718 = vmatpush3.bf16.msra.mxu1 (!%p138_p2), %v763_v3  ;;  %707 = vmatprep.subr.bf16.mxu0 (!%p138_p2), %v764_v4 }
   0xd   : > { %s903_s13 = smov (!%p161_p3, %s619_s13), 1  ;;  %719 = vmatprep.subr.bf16.mxu1 %v765_v5 }
   0xe   : > { %s678_s24 = sshll.u32 %s903_s13, 5  ;;  %s751_s25 = smul.u32 24, %s903_s13 }
   0xf   : > { %s836_s29 = scalar_lea.vmem %s898_s0, %s678_s24  ;;  %708 = vmatpush3.bf16.msra.mxu0 %v764_v4 }
  0x10   : > { %v185_v7 = vld [vmem:[%s836_s29 + $0x1] sm:$0xff]  ;;  %v186_v8 = vld [vmem:[%s836_s29 + $0x9] sm:$0xff]  ;;  %v187_v14 = vld [vmem:[%s836_s29 + $0x11] sm:$0x7]  ;;  %720 = vmatpush3.bf16.msra.mxu1 %v765_v5  ;;  %709 = vmatprep.subr.bf16.mxu0 %v766_v6  ;;  %s170_s30 = scalar_lea.vmem %s901_s3, %s751_s25 }
  0x11   : > { %v172_v9 = vld [vmem:[%s836_s29] sm:$0xff]  ;;  %v188_v11 = vpack.c.bf16 %v186_v8, %v185_v7  ;;  %v173_v12 = vld [vmem:[%s836_s29 + $0x8] sm:$0xff]  ;;  %v174_v15 = vld [vmem:[%s836_s29 + $0x10] sm:$0x7]  ;;  %721 = vmatprep.subr.bf16.mxu1 %v767_v10  ;;  %v189_v18 = vpack.c.bf16 %v187_v14, %v187_v14 }
  0x12   : > { %v175_v13 = vpack.c.bf16 %v173_v12, %v172_v9  ;;  %v176_v19 = vpack.c.bf16 %v174_v15, %v174_v15  ;;  %v356_v22 = vld [vmem:[%s836_s29 + $0x5] sm:$0xff]  ;;  %v357_v23 = vld [vmem:[%s836_s29 + $0xd] sm:$0xff]  ;;  %v358_v32 = vld [vmem:[%s836_s29 + $0x15] sm:$0x7] }
  0x13   : > { %711 = vmatprep.mubr.msk.bf16.mxu0 %vm223_vm0, %v188_v11  ;;  %710 = vmatpush3.bf16.msra.mxu0 %v766_v6  ;;  %v451_v24 = vld [vmem:[%s836_s29 + $0x6] sm:$0xff]  ;;  %v359_v25 = vpack.c.bf16 %v357_v23, %v356_v22  ;;  %v452_v26 = vld [vmem:[%s836_s29 + $0xe] sm:$0xff]  ;;  %v453_v33 = vld [vmem:[%s836_s29 + $0x16] sm:$0x7]  ;;  %v360_v34 = vpack.c.bf16 %v358_v32, %v358_v32 }
  0x14   : > { %723 = vmatprep.mubr.msk.bf16.mxu1 %vm223_vm0, %v175_v13  ;;  %722 = vmatpush3.bf16.msra.mxu1 %v767_v10  ;;  %v454_v28 = vpack.c.bf16 %v452_v26, %v451_v24  ;;  %v455_v35 = vpack.c.bf16 %v453_v33, %v453_v33 }
  0x15   : > { %727 = vmatprep.subr.bf16.mxu0 %v768_v16  ;;  %739 = vmatprep.subr.bf16.mxu1 %v769_v17 }
  0x16   : > { %712 = vmatmul.mubr.msk.bf16.vlgmr.msra.gmra.mrb[0].mxu0 %vm223_vm0, %v189_v18 }
  0x17   : > { %724 = vmatmul.mubr.msk.bf16.vlgmr.msra.gmra.mrb[0].mxu1 %vm223_vm0, %v176_v19  ;;  %728 = vmatpush3.bf16.msra.mxu0 %v768_v16 }
  0x18   : > { %740 = vmatpush3.bf16.msra.mxu1 %v769_v17  ;;  %729 = vmatprep.subr.bf16.mxu0 %v770_v20 }
  0x19   : > { %741 = vmatprep.subr.bf16.mxu1 %v771_v21  ;;  %735 = vmatprep.mubr.msk.bf16.mxu0 %vm223_vm0, %v359_v25 }
  0x1a   : > { %747 = vmatprep.mubr.msk.bf16.mxu1 %vm223_vm0, %v454_v28 }
  0x1b   : > { %730 = vmatpush3.bf16.msra.mxu0 %v770_v20 }
  0x1c   : > { %742 = vmatpush3.bf16.msra.mxu1 %v771_v21  ;;  %731 = vmatprep.subr.bf16.mxu0 %v772_v27 }
  0x1d   : > { %743 = vmatprep.subr.bf16.mxu1 %v773_v29 }
  0x1f   : > { %732 = vmatpush3.bf16.msra.mxu0 %v772_v27 }
  0x20   : > { %744 = vmatpush3.bf16.msra.mxu1 %v773_v29  ;;  %733 = vmatprep.subr.bf16.mxu0 %v774_v30 }
  0x21   : > { %745 = vmatprep.subr.bf16.mxu1 %v775_v31 }
  0x23   : > { %734 = vmatpush3.bf16.msra.mxu0 %v774_v30 }
  0x24   : > { %746 = vmatpush3.bf16.msra.mxu1 %v775_v31 }
  0x26   : > { %736 = vmatmul.mubr.msk.bf16.vlgmr.msra.gmra.mrb[4].mxu0 %vm223_vm0, %v360_v34 }
  0x27   : > { %748 = vmatmul.mubr.msk.bf16.vlgmr.msra.gmra.mrb[4].mxu1 %vm223_vm0, %v455_v35 }
  0xe9   : > { %v713_v36 = vpop.f32.mrb[0].mxu0 }
  0xea   : > { %v725_v37 = vpop.f32.mrb[0].mxu1  ;;  %v264_v38 = vpop.f32.mrb[1].mxu0 }
  0xeb   : > { %v351_v39 = vadd.f32 %v725_v37, %v713_v36  ;;  %v342_v40 = vpop.f32.mrb[1].mxu1  ;;  %v714_v41 = vpop.f32.mrb[2].mxu0 }
  0xec   : > { %v343_v42 = vadd.f32 %v342_v40, %v264_v38  ;;  %v726_v43 = vpop.f32.mrb[2].mxu1  ;;  %v267_v44 = vpop.f32.mrb[3].mxu0 }
  0xed   : > { %v345_v45 = vpop.f32.mrb[3].mxu1 }
  0xee   : > { %v346_v46 = vadd.f32 %v345_v45, %v267_v44 }
  0xf9   : > { %v737_v47 = vpop.f32.mrb[4].mxu0 }
  0xfa   : > { %v450_v48 = vadd.f32 %v737_v47, %v351_v39  ;;  %v749_v49 = vpop.f32.mrb[4].mxu1  ;;  %v434_v50 = vpop.f32.mrb[5].mxu0 }
  0xfb   : > { %v448_v52 = vadd.f32 %v434_v50, %v343_v42  ;;  %v529_v53 = vpop.f32.mrb[5].mxu1  ;;  %v738_v54 = vpop.f32.mrb[6].mxu0 }
  0xfc   : > { %v545_v55 = vadd.f32 %v749_v49, %v450_v48  ;;  %v750_v56 = vpop.f32.mrb[6].mxu1  ;;  %v437_v57 = vpop.f32.mrb[7].mxu0 }
  0xfd   : > { %v543_v58 = vadd.f32 %v529_v53, %v448_v52  ;;  %v449_v59 = vadd.f32 %v437_v57, %v346_v46  ;;  %v532_v60 = vpop.f32.mrb[7].mxu1 }
  0xfe   : > { %v555_v61 = vadd.f32 %v675_v51, %v545_v55 }
  0xff   : > { %v553_v62 = vadd.f32 %v675_v51, %v543_v58  ;;  %v544_v63 = vadd.f32 %v532_v60, %v449_v59 }
 0x100   : > { %v558_v0 = vmax.f32 %v555_v61, 0.0 }
 0x101   : > { %v556_v1 = vmax.f32 %v553_v62, 0.0  ;;  %v554_v2 = vadd.f32 %v675_v51, %v544_v63 }
 0x102   : > { %563 = vst.msk [vmem:[%s170_s30 + $0x10] sm:$0x7] %vm562_vm1, %v558_v0 }
 0x103   : > { %560 = vst.msk [vmem:[%s170_s30] sm:$0xff] %vm559_vm2, %v556_v1  ;;  %v557_v3 = vmax.f32 %v554_v2, 0.0 }
 0x105   : > { %561 = vst.msk [vmem:[%s170_s30 + $0x8] sm:$0xff] %vm559_vm2, %v557_v3 }
 0x106 PF: > { %s13_s12 = sadd.s32 1, %s782_s12  }
 0x107   : > { %p10_p4 = scmp.ge.s32.totalorder %s13_s12, 4  }
 0x109   :  { %12 = sbr.rel (!%p10_p4) target bundleno = 1 (0x1), region = 65 }

// kernel: encoder_forward.7
= control target key start
LH: loop header
LB: loop body
LE: loop exit
PB: predicated region body
PF: predicated region fallthrough
CT: control target
= control target key end

     0   :  { %s1191_s12 = smov 0   ;;  %s1320_s0 = inlined_call_operand.vmem [shape: f32[2,36,32], index: 0, kind: input, shape index: {}]   ;;  %s1321_s1 = inlined_call_operand.vmem [shape: bf16[9,32,32], index: 1, kind: input, shape index: {}]   ;;  %s1322_s2 = inlined_call_operand.vmem [shape: f32[1,32], index: 2, kind: input, shape index: {}]   ;;  %s1323_s3 = inlined_call_operand.vmem [shape: f32[2,22,32], index: 3, kind: output, shape index: {}]  }
   0x1 LB: > { %s949_s13 = sadd.s32 4294967295, %s1169_s12   ;;  %p953_p0 = scmp.ge.s32.totalorder %s1169_s12, 1  ;;  %s1169_s12 = sphi %s1191_s12, %s13_s12  }
   0x2   : > { %p137_p1 = scmp.lt.s32.totalorder %s1169_s12, 3 }
   0x4   : > { %p138_p2 = pnand %p953_p0, %p137_p1 }
   0x5   : > { %v1145_v0 = vld [vmem:[%s1321_s1 + $0x10] sm:$0xff] (!%p138_p2)   ;;  %p161_p3 = scmp.lt.s32.totalorder (!%p138_p2), %s949_s13, 1  ;;  %v1146_v1 = vld [vmem:[%s1321_s1] sm:$0xff] (!%p138_p2)   ;;  %v1147_v2 = vld [vmem:[%s1321_s1 + $0x18] sm:$0xff] (!%p138_p2)   ;;  %vm203_vm0 = vcmask (!%p138_p2), 261120   ;;  %vm892_vm1 = vcmask (!%p138_p2), 259072  }
   0x6   : > { %141 = sbr.rel (%p138_p2) target bundleno = 275 (0x113), region = 32  ;;  %1063 = vmatprep.subr.bf16.mxu0 (!%p138_p2), %v1145_v0  ;;  %1071 = vmatprep.subr.bf16.mxu1 (!%p138_p2), %v1146_v1  ;;  %v1148_v3 = vld [vmem:[%s1321_s1 + $0x8] sm:$0xff] (!%p138_p2)   ;;  %v1149_v4 = vld [vmem:[%s1321_s1 + $0x20] sm:$0xff] (!%p138_p2)   ;;  %v1150_v5 = vld [vmem:[%s1321_s1 + $0x30] sm:$0xff] (!%p138_p2)  }
   0x7   : > { %1064 = vmatpush3.bf16.msra.mxu0 (!%p138_p2), %v1145_v0  ;;  %1072 = vmatpush3.bf16.msra.mxu1 (!%p138_p2), %v1146_v1  ;;  %v1151_v16 = vld [vmem:[%s1321_s1 + $0x28] sm:$0xff] (!%p138_p2)   ;;  %v1152_v17 = vld [vmem:[%s1321_s1 + $0x38] sm:$0xff] (!%p138_p2)   ;;  %v1153_v22 = vld [vmem:[%s1321_s1 + $0x40] sm:$0xff] (!%p138_p2)  }
   0x8   : > { %1065 = vmatprep.subr.bf16.mxu0 (!%p138_p2), %v1147_v2  ;;  %1073 = vmatprep.subr.bf16.mxu1 (!%p138_p2), %v1148_v3  ;;  %v1154_v27 = vld [vmem:[%s1321_s1 + $0x50] sm:$0xff] (!%p138_p2)   ;;  %v1155_v32 = vld [vmem:[%s1321_s1 + $0x48] sm:$0xff] (!%p138_p2)   ;;  %v1156_v33 = vld [vmem:[%s1321_s1 + $0x58] sm:$0xff] (!%p138_p2)  }
   0x9   : > { %v1157_v38 = vld [vmem:[%s1321_s1 + $0x60] sm:$0xff] (!%p138_p2)   ;;  %v1158_v40 = vld [vmem:[%s1321_s1 + $0x70] sm:$0xff] (!%p138_p2)   ;;  %v1159_v47 = vld [vmem:[%s1321_s1 + $0x68] sm:$0xff] (!%p138_p2)  }
   0xa   : > { %v1160_v48 = vld [vmem:[%s1321_s1 + $0x78] sm:$0xff] (!%p138_p2)   ;;  %v1161_v52 = vld [vmem:[%s1321_s1 + $0x80] sm:$0xff] (!%p138_p2)   ;;  %v1162_v57 = vld [vmem:[%s1321_s1 + $0x88] sm:$0xff] (!%p138_p2)  }
   0xb   : > { %1066 = vmatpush3.bf16.msra.mxu0 (!%p138_p2), %v1147_v2  ;;  %1074 = vmatpush3.bf16.msra.mxu1 (!%p138_p2), %v1148_v3 }
   0xc   : > { %1079 = vmatprep.subr.bf16.mxu0 (!%p138_p2), %v1149_v4  ;;  %1087 = vmatprep.subr.bf16.mxu1 (!%p138_p2), %v1150_v5 }
   0xd   : > { %s1325_s13 = smov (!%p161_p3, %s949_s13), 1 }
   0xe   : > { %s1135_s22 = smul.u32 40, %s1325_s13 }
  0x10   : > { %s1223_s29 = scalar_lea.vmem %s1320_s0, %s1135_s22 }
  0x11   : > { %v181_v6 = vld [vmem:[%s1223_s29 + $0x1] sm:$0xff]  ;;  %v182_v7 = vld [vmem:[%s1223_s29 + $0x9] sm:$0xff]  ;;  %v183_v11 = vld [vmem:[%s1223_s29 + $0x11] sm:$0x3f] }
  0x12   : > { %v172_v8 = vld [vmem:[%s1223_s29] sm:$0xff]  ;;  %v184_v9 = vpack.c.bf16 %v182_v7, %v181_v6  ;;  %v173_v10 = vld [vmem:[%s1223_s29 + $0x8] sm:$0xff]  ;;  %v174_v12 = vld [vmem:[%s1223_s29 + $0x10] sm:$0x3f]  ;;  %v185_v14 = vpack.c.bf16 %v183_v11, %v183_v11 }
  0x13   : > { %v175_v13 = vpack.c.bf16 %v173_v10, %v172_v8  ;;  %v176_v15 = vpack.c.bf16 %v174_v12, %v174_v12  ;;  %v324_v18 = vld [vmem:[%s1223_s29 + $0x2] sm:$0xff]  ;;  %v325_v19 = vld [vmem:[%s1223_s29 + $0xa] sm:$0xff]  ;;  %v326_v21 = vld [vmem:[%s1223_s29 + $0x12] sm:$0x3f] }
  0x14   : > { %1067 = vmatprep.mubr.msk.bf16.mxu0 %vm203_vm0, %v184_v9  ;;  %v327_v20 = vpack.c.bf16 %v325_v19, %v324_v18  ;;  %v403_v23 = vld [vmem:[%s1223_s29 + $0x6] sm:$0xff]  ;;  %v1249_v24 = vld [vmem:[%s1223_s29 + $0xe] sm:$0xff]  ;;  %v405_v26 = vld [vmem:[%s1223_s29 + $0x16] sm:$0x3f]  ;;  %v328_v28 = vpack.c.bf16 %v326_v21, %v326_v21 }
  0x15   : > { %1075 = vmatprep.mubr.msk.bf16.mxu1 %vm203_vm0, %v175_v13  ;;  %1068 = vmatmul.mubr.msk.bf16.vlgmr.msra.gmra.mrb[0].mxu0 %vm203_vm0, %v185_v14  ;;  %v406_v25 = vpack.c.bf16 %v1249_v24, %v403_v23  ;;  %v407_v29 = vpack.c.bf16 %v405_v26, %v405_v26  ;;  %v482_v30 = vld [vmem:[%s1223_s29 + $0x7] sm:$0xff]  ;;  %v483_v31 = vld [vmem:[%s1223_s29 + $0xf] sm:$0xff]  ;;  %v484_v37 = vld [vmem:[%s1223_s29 + $0x17] sm:$0x3f] }
  0x16   : > { %1076 = vmatmul.mubr.msk.bf16.vlgmr.msra.gmra.mrb[0].mxu1 %vm203_vm0, %v176_v15  ;;  %1080 = vmatpush3.bf16.msra.mxu0 %v1149_v4  ;;  %v485_v34 = vpack.c.bf16 %v483_v31, %v482_v30  ;;  %v562_v35 = vld [vmem:[%s1223_s29 + $0x10] sm:$0xff]  ;;  %v563_v39 = vld [vmem:[%s1223_s29 + $0x18] sm:$0x3f]  ;;  %v486_v41 = vpack.c.bf16 %v484_v37, %v484_v37  ;;  %v800_v59 = vld [vmem:[%s1223_s29 + $0x1e] sm:$0x3f] }
  0x17   : > { %1088 = vmatpush3.bf16.msra.mxu1 %v1150_v5  ;;  %1081 = vmatprep.subr.bf16.mxu0 %v1151_v16  ;;  %v564_v36 = vpack.c.bf16 %v562_v35, %v173_v10  ;;  %v640_v42 = vld [vmem:[%s1223_s29 + $0xc] sm:$0xff]  ;;  %v641_v43 = vld [vmem:[%s1223_s29 + $0x14] sm:$0xff]  ;;  %v565_v44 = vpack.c.bf16 %v563_v39, %v563_v39  ;;  %v642_v51 = vld [vmem:[%s1223_s29 + $0x1c] sm:$0x3f]  ;;  %v802_v60 = vpack.c.bf16 %v800_v59, %v800_v59 }
  0x18   : > { %1089 = vmatprep.subr.bf16.mxu1 %v1152_v17  ;;  %1083 = vmatprep.mubr.msk.bf16.mxu0 %vm203_vm0, %v327_v20  ;;  %v719_v45 = vld [vmem:[%s1223_s29 + $0xd] sm:$0xff]  ;;  %v720_v46 = vld [vmem:[%s1223_s29 + $0x15] sm:$0xff]  ;;  %v643_v49 = vpack.c.bf16 %v641_v43, %v640_v42  ;;  %v721_v53 = vld [vmem:[%s1223_s29 + $0x1d] sm:$0x3f]  ;;  %v644_v55 = vpack.c.bf16 %v642_v51, %v642_v51 }
  0x19   : > { %1091 = vmatprep.mubr.msk.bf16.mxu1 %vm203_vm0, %v406_v25  ;;  %v722_v50 = vpack.c.bf16 %v720_v46, %v719_v45  ;;  %v799_v54 = vld [vmem:[%s1223_s29 + $0x16] sm:$0xff]  ;;  %v723_v56 = vpack.c.bf16 %v721_v53, %v721_v53  ;;  %s1136_s29 = smul.u32 24, %s1325_s13  ;;  %v1024_v51 = vld [vmem:[%s1322_s2] ss:$0 sm:$0xff] }
  0x1a   : > { %1082 = vmatpush3.bf16.msra.mxu0 %v1151_v16  ;;  %v801_v58 = vpack.c.bf16 %v799_v54, %v1249_v24 }
  0x1b   : > { %1090 = vmatpush3.bf16.msra.mxu1 %v1152_v17  ;;  %1095 = vmatprep.subr.bf16.mxu0 %v1153_v22  ;;  %s170_s7 = scalar_lea.vmem %s1323_s3, %s1136_s29 }
  0x1c   : > { %1103 = vmatprep.subr.bf16.mxu1 %v1154_v27 }
  0x1d   : > { %1084 = vmatmul.mubr.msk.bf16.vlgmr.msra.gmra.mrb[4].mxu0 %vm203_vm0, %v328_v28 }
  0x1e   : > { %1096 = vmatpush3.bf16.msra.mxu0 %v1153_v22  ;;  %1092 = vmatmul.mubr.msk.bf16.vlgmr.msra.gmra.mrb[4].mxu1 %vm203_vm0, %v407_v29 }
  0x1f   : > { %1104 = vmatpush3.bf16.msra.mxu1 %v1154_v27  ;;  %1097 = vmatprep.subr.bf16.mxu0 %v1155_v32 }
  0x20   : > { %1105 = vmatprep.subr.bf16.mxu1 %v1156_v33  ;;  %1099 = vmatprep.mubr.msk.bf16.mxu0 %vm203_vm0, %v485_v34 }
  0x21   : > { %1107 = vmatprep.mubr.msk.bf16.mxu1 %vm203_vm0, %v564_v36 }
  0x22   : > { %1098 = vmatpush3.bf16.msra.mxu0 %v1155_v32 }
  0x23   : > { %1106 = vmatpush3.bf16.msra.mxu1 %v1156_v33  ;;  %1111 = vmatprep.subr.bf16.mxu0 %v1157_v38 }
  0x24   : > { %1119 = vmatprep.subr.bf16.mxu1 %v1158_v40 }
  0x25   : > { %1100 = vmatmul.mubr.msk.bf16.vlgmr.msra.gmra.mrb[8].mxu0 %vm203_vm0, %v486_v41 }
  0x26   : > { %1112 = vmatpush3.bf16.msra.mxu0 %v1157_v38  ;;  %1108 = vmatmul.mubr.msk.bf16.vlgmr.msra.gmra.mrb[8].mxu1 %vm203_vm0, %v565_v44 }
  0x27   : > { %1120 = vmatpush3.bf16.msra.mxu1 %v1158_v40  ;;  %1113 = vmatprep.subr.bf16.mxu0 %v1159_v47 }
  0x28   : > { %1121 = vmatprep.subr.bf16.mxu1 %v1160_v48  ;;  %1115 = vmatprep.mubr.msk.bf16.mxu0 %vm203_vm0, %v643_v49 }
  0x29   : > { %1123 = vmatprep.mubr.msk.bf16.mxu1 %vm203_vm0, %v722_v50 }
  0x2a   : > { %1114 = vmatpush3.bf16.msra.mxu0 %v1159_v47 }
  0x2b   : > { %1122 = vmatpush3.bf16.msra.mxu1 %v1160_v48  ;;  %1127 = vmatprep.subr.bf16.mxu0 %v1161_v52 }
  0x2d   : > { %1116 = vmatmul.mubr.msk.bf16.vlgmr.msra.gmra.mrb[12].mxu0 %vm203_vm0, %v644_v55 }
  0x2e   : > { %1128 = vmatpush3.bf16.msra.mxu0 %v1161_v52  ;;  %1124 = vmatmul.mubr.msk.bf16.vlgmr.msra.gmra.mrb[12].mxu1 %vm203_vm0, %v723_v56 }
  0x2f   : > { %1129 = vmatprep.subr.bf16.mxu0 %v1162_v57  ;;  %1131 = vmatprep.mubr.msk.bf16.mxu0 %vm203_vm0, %v801_v58 }
  0x32   : > { %1130 = vmatpush3.bf16.msra.mxu0 %v1162_v57 }
  0x35   : > { %1132 = vmatmul.mubr.msk.bf16.vlgmr.msra.gmra.mrb[16].mxu0 %vm203_vm0, %v802_v60 }
  0xe8   : > { %v1069_v61 = vpop.f32.mrb[0].mxu0 }
  0xe9   : > { %v1077_v62 = vpop.f32.mrb[0].mxu1  ;;  %v244_v63 = vpop.f32.mrb[1].mxu0 }
  0xea   : > { %v319_v0 = vadd.f32 %v1077_v62, %v1069_v61  ;;  %v310_v1 = vpop.f32.mrb[1].mxu1  ;;  %v1070_v2 = vpop.f32.mrb[2].mxu0 }
  0xeb   : > { %v311_v3 = vadd.f32 %v310_v1, %v244_v63  ;;  %v1078_v4 = vpop.f32.mrb[2].mxu1  ;;  %v247_v5 = vpop.f32.mrb[3].mxu0 }
  0xec   : > { %v313_v6 = vpop.f32.mrb[3].mxu1 }
  0xed   : > { %v314_v7 = vadd.f32 %v313_v6, %v247_v5 }
  0xf0   : > { %v1085_v8 = vpop.f32.mrb[4].mxu0 }
  0xf1   : > { %v402_v9 = vadd.f32 %v1085_v8, %v319_v0  ;;  %v386_v10 = vpop.f32.mrb[5].mxu0  ;;  %v1093_v11 = vpop.f32.mrb[4].mxu1 }
  0xf2   : > { %v400_v12 = vadd.f32 %v386_v10, %v311_v3  ;;  %v1086_v13 = vpop.f32.mrb[6].mxu0  ;;  %v465_v14 = vpop.f32.mrb[5].mxu1 }
  0xf3   : > { %v481_v15 = vadd.f32 %v1093_v11, %v402_v9  ;;  %v389_v16 = vpop.f32.mrb[7].mxu0  ;;  %v1094_v17 = vpop.f32.mrb[6].mxu1 }
  0xf4   : > { %v401_v18 = vadd.f32 %v389_v16, %v314_v7  ;;  %v479_v19 = vadd.f32 %v465_v14, %v400_v12  ;;  %v468_v20 = vpop.f32.mrb[7].mxu1 }
  0xf6   : > { %v480_v21 = vadd.f32 %v468_v20, %v401_v18 }
  0xf8   : > { %v1101_v22 = vpop.f32.mrb[8].mxu0 }
  0xf9   : > { %v560_v23 = vadd.f32 %v1101_v22, %v481_v15  ;;  %v544_v24 = vpop.f32.mrb[9].mxu0  ;;  %v1109_v25 = vpop.f32.mrb[8].mxu1 }
  0xfa   : > { %v558_v26 = vadd.f32 %v544_v24, %v479_v19  ;;  %v1102_v27 = vpop.f32.mrb[10].mxu0  ;;  %v623_v28 = vpop.f32.mrb[9].mxu1 }
  0xfb   : > { %v639_v29 = vadd.f32 %v1109_v25, %v560_v23  ;;  %v547_v30 = vpop.f32.mrb[11].mxu0  ;;  %v1110_v31 = vpop.f32.mrb[10].mxu1 }
  0xfc   : > { %v559_v32 = vadd.f32 %v547_v30, %v480_v21  ;;  %v637_v33 = vadd.f32 %v623_v28, %v558_v26  ;;  %v626_v34 = vpop.f32.mrb[11].mxu1 }
  0xfe   : > { %v638_v35 = vadd.f32 %v626_v34, %v559_v32 }
 0x100   : > { %v1117_v36 = vpop.f32.mrb[12].mxu0 }
 0x101   : > { %v718_v37 = vadd.f32 %v1117_v36, %v639_v29  ;;  %v702_v38 = vpop.f32.mrb[13].mxu0  ;;  %v1125_v39 = vpop.f32.mrb[12].mxu1 }
 0x102   : > { %v716_v40 = vadd.f32 %v702_v38, %v637_v33  ;;  %v1118_v41 = vpop.f32.mrb[14].mxu0  ;;  %v781_v42 = vpop.f32.mrb[13].mxu1 }
 0x103   : > { %v797_v43 = vadd.f32 %v1125_v39, %v718_v37  ;;  %v705_v44 = vpop.f32.mrb[15].mxu0  ;;  %v1126_v45 = vpop.f32.mrb[14].mxu1 }
 0x104   : > { %v717_v46 = vadd.f32 %v705_v44, %v638_v35  ;;  %v795_v47 = vadd.f32 %v781_v42, %v716_v40  ;;  %v784_v48 = vpop.f32.mrb[15].mxu1 }
 0x106   : > { %v796_v49 = vadd.f32 %v784_v48, %v717_v46 }
 0x108   : > { %v1133_v50 = vpop.f32.mrb[16].mxu0 }
 0x109   : > { %v876_v52 = vadd.f32 %v1133_v50, %v797_v43  ;;  %v860_v53 = vpop.f32.mrb[17].mxu0 }
 0x10a   : > { %v874_v54 = vadd.f32 %v860_v53, %v795_v47  ;;  %v1134_v55 = vpop.f32.mrb[18].mxu0 }
 0x10b   : > { %v886_v56 = vadd.f32 %v1024_v51, %v876_v52  ;;  %v863_v57 = vpop.f32.mrb[19].mxu0 }
 0x10c   : > { %v884_v58 = vadd.f32 %v1024_v51, %v874_v54  ;;  %v875_v59 = vadd.f32 %v863_v57, %v796_v49 }
 0x10d   : > { %v889_v60 = vmax.f32 %v886_v56, 0.0 }
 0x10e   : > { %v887_v61 = vmax.f32 %v884_v58, 0.0  ;;  %v885_v62 = vadd.f32 %v1024_v51, %v875_v59 }
 0x10f   : > { %893 = vst.msk [vmem:[%s170_s7 + $0x10] sm:$0x3f] %vm892_vm1, %v889_v60 }
 0x110   : > { %890 = vst.msk [vmem:[%s170_s7] sm:$0xff] %vm203_vm0, %v887_v61  ;;  %v888_v63 = vmax.f32 %v885_v62, 0.0 }
 0x112   : > { %891 = vst.msk [vmem:[%s170_s7 + $0x8] sm:$0xff] %vm203_vm0, %v888_v63 }
 0x113 PF: > { %s13_s12 = sadd.s32 1, %s1169_s12  }
 0x114   : > { %p10_p4 = scmp.ge.s32.totalorder %s13_s12, 4  }
 0x116   :  { %12 = sbr.rel (!%p10_p4) target bundleno = 1 (0x1), region = 70 }

// kernel: encoder_forward.8
= control target key start
LH: loop header
LB: loop body
LE: loop exit
PB: predicated region body
PF: predicated region fallthrough
CT: control target
= control target key end

     0   :  { %s1367_s18 = smov 0   ;;  %s1517_s0 = inlined_call_operand.vmem [shape: f32[2,36,32], index: 0, kind: input, shape index: {}]   ;;  %s1518_s1 = inlined_call_operand.vmem [shape: bf16[9,32,8], index: 1, kind: input, shape index: {}]   ;;  %s1519_s2 = inlined_call_operand.vmem [shape: f32[1,8], index: 2, kind: input, shape index: {}]   ;;  %s1520_s3 = inlined_call_operand.vmem [shape: bf16[8,32], index: 3, kind: input, shape index: {}]   ;;  %s1521_s4 = inlined_call_operand.vmem [shape: f32[1,32], index: 4, kind: input, shape index: {}]   ;;  %s1522_s5 = inlined_call_operand.vmem [shape: f32[2,22,32], index: 5, kind: output, shape index: {}]  }
   0x1 LB: > { %s1102_s19 = sadd.s32 4294967295, %s1335_s18   ;;  %p1106_p0 = scmp.ge.s32.totalorder %s1335_s18, 1  ;;  %s1335_s18 = sphi %s1367_s18, %s15_s18  }
   0x2   : > { %p187_p1 = scmp.lt.s32.totalorder %s1335_s18, 3 }
   0x4   : > { %p188_p2 = pnand %p1106_p0, %p187_p1 }
   0x5   : > { %v1311_v0 = vld [vmem:[%s1518_s1 + $0x10] sm:$0xff] (!%p188_p2)   ;;  %p215_p3 = scmp.lt.s32.totalorder (!%p188_p2), %s1102_s19, 1  ;;  %v1312_v1 = vld [vmem:[%s1518_s1] sm:$0xff] (!%p188_p2)   ;;  %v1313_v2 = vld [vmem:[%s1518_s1 + $0x18] sm:$0xff] (!%p188_p2)   ;;  %vm263_vm0 = vcmask (!%p188_p2), 261120   ;;  %vm988_vm1 = vcmask (!%p188_p2), 1043456  }
   0x6   : > { %191 = sbr.rel (%p188_p2) target bundleno = 499 (0x1f3), region = 40  ;;  %1222 = vmatprep.subr.bf16.mxu0 (!%p188_p2), %v1311_v0  ;;  %1230 = vmatprep.subr.bf16.mxu1 (!%p188_p2), %v1312_v1  ;;  %v1314_v3 = vld [vmem:[%s1518_s1 + $0x8] sm:$0xff] (!%p188_p2)   ;;  %v1315_v4 = vld [vmem:[%s1518_s1 + $0x20] sm:$0xff] (!%p188_p2)   ;;  %v1316_v5 = vld [vmem:[%s1518_s1 + $0x30] sm:$0xff] (!%p188_p2)   ;;  %vm981_vm2 = vcmask (!%p188_p2), 64512   ;;  %vm1045_vm3 = vcmask (!%p188_p2), 259072  }
   0x7   : > { %1223 = vmatpush3.bf16.msra.mxu0 (!%p188_p2), %v1311_v0  ;;  %1231 = vmatpush3.bf16.msra.mxu1 (!%p188_p2), %v1312_v1  ;;  %v1317_v19 = vld [vmem:[%s1518_s1 + $0x28] sm:$0xff] (!%p188_p2)   ;;  %v1318_v26 = vld [vmem:[%s1518_s1 + $0x38] sm:$0xff] (!%p188_p2)   ;;  %v1319_v37 = vld [vmem:[%s1518_s1 + $0x40] sm:$0xff] (!%p188_p2)  }
   0x8   : > { %1224 = vmatprep.subr.bf16.mxu0 (!%p188_p2), %v1313_v2  ;;  %1232 = vmatprep.subr.bf16.mxu1 (!%p188_p2), %v1314_v3  ;;  %v1320_v39 = vld [vmem:[%s1518_s1 + $0x50] sm:$0xff] (!%p188_p2)   ;;  %v1321_v47 = vld [vmem:[%s1518_s1 + $0x48] sm:$0xff] (!%p188_p2)   ;;  %v1322_v51 = vld [vmem:[%s1518_s1 + $0x58] sm:$0xff] (!%p188_p2)  }
   0x9   : > { %v1323_v55 = vld [vmem:[%s1518_s1 + $0x60] sm:$0xff] (!%p188_p2)   ;;  %v1324_v59 = vld [vmem:[%s1518_s1 + $0x70] sm:$0xff] (!%p188_p2)  }
   0xb   : > { %1225 = vmatpush3.bf16.msra.mxu0 (!%p188_p2), %v1313_v2  ;;  %1233 = vmatpush3.bf16.msra.mxu1 (!%p188_p2), %v1314_v3 }
   0xc   : > { %1238 = vmatprep.subr.bf16.mxu0 (!%p188_p2), %v1315_v4  ;;  %1246 = vmatprep.subr.bf16.mxu1 (!%p188_p2), %v1316_v5 }
   0xd   : > { %s1524_s19 = smov (!%p215_p3, %s1102_s19), 1 }
   0xe   : > { %s1301_s28 = smul.u32 40, %s1524_s19 }
   0xf   : > { %s1302_s16 = smul.u32 24, %s1524_s19 }
  0x10   : > { %s1399_s10 = scalar_lea.vmem %s1517_s0, %s1301_s28 }
  0x11   : > { %v238_v6 = vld [vmem:[%s1399_s10 + $0x1] sm:$0xff]  ;;  %v239_v7 = vld [vmem:[%s1399_s10 + $0x9] sm:$0xff]  ;;  %v240_v13 = vld [vmem:[%s1399_s10 + $0x11] sm:$0x3f]  ;;  %s224_s23 = scalar_lea.vmem %s1522_s5, %s1302_s16 }
  0x12   : > { %v226_v8 = vld [vmem:[%s1399_s10] sm:$0xff]  ;;  %v241_v9 = vmax.f32 %v238_v6, 0.0  ;;  %v242_v10 = vmax.f32 %v239_v7, 0.0  ;;  %v227_v11 = vld [vmem:[%s1399_s10 + $0x8] sm:$0xff]  ;;  %v243_v15 = vmax.f32 %v240_v13, 0.0  ;;  %v631_v46 = vld [vmem:[%s1399_s10 + $0x10] sm:$0xff] }
  0x13   : > { %v229_v12 = vmax.f32 %v226_v8, 0.0  ;;  %v230_v14 = vmax.f32 %v227_v11, 0.0  ;;  %v228_v16 = vld [vmem:[%s1399_s10 + $0x10] sm:$0x3f]  ;;  %v384_v20 = vld [vmem:[%s1399_s10 + $0x2] sm:$0xff]  ;;  %v634_v49 = vmax.f32 %v631_v46, 0.0 }
  0x14   : > { %v244_v17 = vpack.c.bf16 %v242_v10, %v241_v9  ;;  %v231_v18 = vmax.f32 %v228_v16, 0.0  ;;  %v245_v22 = vpack.c.bf16 %v243_v15, %v243_v15  ;;  %v385_v23 = vld [vmem:[%s1399_s10 + $0xa] sm:$0xff]  ;;  %v387_v24 = vmax.f32 %v384_v20, 0.0  ;;  %v386_v28 = vld [vmem:[%s1399_s10 + $0x12] sm:$0x3f]  ;;  %v1326_v7 = vld [vmem:[%s1518_s1 + $0x78] sm:$0xff]  }
  0x15   : > { %v232_v21 = vpack.c.bf16 %v230_v14, %v229_v12  ;;  %v388_v27 = vmax.f32 %v385_v23, 0.0  ;;  %v466_v29 = vld [vmem:[%s1399_s10 + $0x6] sm:$0xff]  ;;  %v389_v30 = vmax.f32 %v386_v28, 0.0  ;;  %v1421_v31 = vld [vmem:[%s1399_s10 + $0xe] sm:$0xff]  ;;  %v468_v33 = vld [vmem:[%s1399_s10 + $0x16] sm:$0x3f]  ;;  %v636_v54 = vpack.c.bf16 %v634_v49, %v230_v14 }
  0x16   : > { %1226 = vmatprep.mubr.msk.bf16.mxu0 %vm263_vm0, %v244_v17  ;;  %v233_v25 = vpack.c.bf16 %v231_v18, %v231_v18  ;;  %v469_v32 = vmax.f32 %v466_v29, 0.0  ;;  %v470_v35 = vmax.f32 %v1421_v31, 0.0  ;;  %v471_v36 = vmax.f32 %v468_v33, 0.0  ;;  %v1436_v41 = vld [vmem:[%s1399_s10 + $0x7] sm:$0xff]  ;;  %v1439_v42 = vld [vmem:[%s1399_s10 + $0xf] sm:$0xff] }
  0x17   : > { %1234 = vmatprep.mubr.msk.bf16.mxu1 %vm263_vm0, %v232_v21  ;;  %1227 = vmatmul.mubr.msk.bf16.vlgmr.msra.gmra.mrb[0].mxu0 %vm263_vm0, %v245_v22  ;;  %v390_v34 = vpack.c.bf16 %v388_v27, %v387_v24  ;;  %v391_v40 = vpack.c.bf16 %v389_v30, %v389_v30  ;;  %v551_v44 = vmax.f32 %v1436_v41, 0.0  ;;  %v552_v45 = vmax.f32 %v1439_v42, 0.0  ;;  %v1449_v48 = vld [vmem:[%s1399_s10 + $0x17] sm:$0x3f]  ;;  %v712_v57 = vld [vmem:[%s1399_s10 + $0xc] sm:$0xff]  ;;  %v1327_v13 = vld [vmem:[%s1518_s1 + $0x80] sm:$0xff]  }
  0x18   : > { %1235 = vmatmul.mubr.msk.bf16.vlgmr.msra.gmra.mrb[0].mxu1 %vm263_vm0, %v233_v25  ;;  %1239 = vmatpush3.bf16.msra.mxu0 %v1315_v4  ;;  %v472_v38 = vpack.c.bf16 %v470_v35, %v469_v32  ;;  %v473_v43 = vpack.c.bf16 %v471_v36, %v471_v36  ;;  %v632_v50 = vld [vmem:[%s1399_s10 + $0x18] sm:$0x3f]  ;;  %v553_v53 = vmax.f32 %v1449_v48, 0.0  ;;  %v715_v60 = vmax.f32 %v712_v57, 0.0  ;;  %v794_v62 = vld [vmem:[%s1399_s10 + $0xd] sm:$0xff] }
  0x19   : > { %1240 = vmatprep.subr.bf16.mxu0 %v1317_v19  ;;  %1247 = vmatpush3.bf16.msra.mxu1 %v1316_v5  ;;  %v554_v52 = vpack.c.bf16 %v552_v45, %v551_v44  ;;  %v635_v56 = vmax.f32 %v632_v50, 0.0  ;;  %v713_v58 = vld [vmem:[%s1399_s10 + $0x14] sm:$0xff]  ;;  %v797_v1 = vmax.f32 %v794_v62, 0.0  ;;  %v714_v3 = vld [vmem:[%s1399_s10 + $0x1c] sm:$0x3f]  ;;  %v1325_v5 = vld [vmem:[%s1518_s1 + $0x68] sm:$0xff]  }
  0x1a   : > { %1248 = vmatprep.subr.bf16.mxu1 %v1318_v26  ;;  %1242 = vmatprep.mubr.msk.bf16.mxu0 %vm263_vm0, %v390_v34  ;;  %v716_v61 = vmax.f32 %v713_v58, 0.0  ;;  %v555_v63 = vpack.c.bf16 %v553_v53, %v553_v53  ;;  %v795_v0 = vld [vmem:[%s1399_s10 + $0x15] sm:$0xff]  ;;  %v796_v6 = vld [vmem:[%s1399_s10 + $0x1d] sm:$0x3f]  ;;  %v717_v10 = vmax.f32 %v714_v3, 0.0  ;;  %v1328_v18 = vld [vmem:[%s1518_s1 + $0x88] sm:$0xff]  }
  0x1b   : > { %1250 = vmatprep.mubr.msk.bf16.mxu1 %vm263_vm0, %v472_v38  ;;  %v637_v2 = vpack.c.bf16 %v635_v56, %v635_v56  ;;  %v798_v4 = vmax.f32 %v795_v0, 0.0  ;;  %v877_v9 = vld [vmem:[%s1399_s10 + $0x16] sm:$0xff]  ;;  %v799_v12 = vmax.f32 %v796_v6, 0.0  ;;  %v878_v17 = vld [vmem:[%s1399_s10 + $0x1e] sm:$0x3f] }
  0x1c   : > { %1241 = vmatpush3.bf16.msra.mxu0 %v1317_v19  ;;  %v718_v8 = vpack.c.bf16 %v716_v61, %v715_v60  ;;  %v880_v14 = vmax.f32 %v877_v9, 0.0  ;;  %v719_v15 = vpack.c.bf16 %v717_v10, %v717_v10  ;;  %v881_v20 = vmax.f32 %v878_v17, 0.0  ;;  %v973_v22 = vld [vmem:[%s1520_s3] sm:$0xf] }
  0x1d   : > { %1249 = vmatpush3.bf16.msra.mxu1 %v1318_v26  ;;  %1254 = vmatprep.subr.bf16.mxu0 %v1319_v37  ;;  %v800_v11 = vpack.c.bf16 %v798_v4, %v797_v1  ;;  %v801_v16 = vpack.c.bf16 %v799_v12, %v799_v12  ;;  %v990_v23 = vsel %vm988_vm1, %v973_v22, 0  ;;  %v1177_v17 = vld [vmem:[%s1519_s2] ss:$0 sm:$0xff] }
  0x1e   : > { %1262 = vmatprep.subr.bf16.mxu1 %v1320_v39  ;;  %v882_v19 = vpack.c.bf16 %v880_v14, %v470_v35  ;;  %v883_v21 = vpack.c.bf16 %v881_v20, %v881_v20 }
  0x1f   : > { %1243 = vmatmul.mubr.msk.bf16.vlgmr.msra.gmra.mrb[4].mxu0 %vm263_vm0, %v391_v40 }
  0x20   : > { %1255 = vmatpush3.bf16.msra.mxu0 %v1319_v37  ;;  %1251 = vmatmul.mubr.msk.bf16.vlgmr.msra.gmra.mrb[4].mxu1 %vm263_vm0, %v473_v43 }
  0x21   : > { %1256 = vmatprep.subr.bf16.mxu0 %v1321_v47  ;;  %1263 = vmatpush3.bf16.msra.mxu1 %v1320_v39 }
  0x22   : > { %1264 = vmatprep.subr.bf16.mxu1 %v1322_v51  ;;  %1258 = vmatprep.mubr.msk.bf16.mxu0 %vm263_vm0, %v554_v52 }
  0x23   : > { %1266 = vmatprep.mubr.msk.bf16.mxu1 %vm263_vm0, %v636_v54 }
  0x24   : > { %1257 = vmatpush3.bf16.msra.mxu0 %v1321_v47 }
  0x25   : > { %1265 = vmatpush3.bf16.msra.mxu1 %v1322_v51  ;;  %1270 = vmatprep.subr.bf16.mxu0 %v1323_v55 }
  0x26   : > { %1278 = vmatprep.subr.bf16.mxu1 %v1324_v59 }
  0x27   : > { %1259 = vmatmul.mubr.msk.bf16.vlgmr.msra.gmra.mrb[8].mxu0 %vm263_vm0, %v555_v63 }
  0x28   : > { %1271 = vmatpush3.bf16.msra.mxu0 %v1323_v55  ;;  %1267 = vmatmul.mubr.msk.bf16.vlgmr.msra.gmra.mrb[8].mxu1 %vm263_vm0, %v637_v2 }
  0x29   : > { %1272 = vmatprep.subr.bf16.mxu0 %v1325_v5  ;;  %1279 = vmatpush3.bf16.msra.mxu1 %v1324_v59 }
  0x2a   : > { %1280 = vmatprep.subr.bf16.mxu1 %v1326_v7  ;;  %1274 = vmatprep.mubr.msk.bf16.mxu0 %vm263_vm0, %v718_v8 }
  0x2b   : > { %1282 = vmatprep.mubr.msk.bf16.mxu1 %vm263_vm0, %v800_v11 }
  0x2c   : > { %1273 = vmatpush3.bf16.msra.mxu0 %v1325_v5 }
  0x2d   : > { %1281 = vmatpush3.bf16.msra.mxu1 %v1326_v7  ;;  %1286 = vmatprep.subr.bf16.mxu0 %v1327_v13 }
  0x2e   : > { %1300 = vmatprep.subr.msk.bf16.mxu1 %vm988_vm1, %v973_v22 }
  0x2f   : > { %1275 = vmatmul.mubr.msk.bf16.vlgmr.msra.gmra.mrb[12].mxu0 %vm263_vm0, %v719_v15 }
  0x30   : > { %1287 = vmatpush3.bf16.msra.mxu0 %v1327_v13  ;;  %1283 = vmatmul.mubr.msk.bf16.vlgmr.msra.gmra.mrb[12].mxu1 %vm263_vm0, %v801_v16 }
  0x31   : > { %1288 = vmatprep.subr.bf16.mxu0 %v1328_v18  ;;  %1290 = vmatprep.mubr.msk.bf16.mxu0 %vm263_vm0, %v882_v19 }
  0x32   : > { %1295 = vmatpush3.bf16.msra.mxu1 %v990_v23 }
  0x34   : > { %1289 = vmatpush3.bf16.msra.mxu0 %v1328_v18 }
  0x37   : > { %1291 = vmatmul.mubr.msk.bf16.vlgmr.msra.gmra.mrb[16].mxu0 %vm263_vm0, %v883_v21 }
  0xea   : > { %v1228_v24 = vpop.f32.mrb[0].mxu0 }
  0xeb   : > { %v1236_v25 = vpop.f32.mrb[0].mxu1  ;;  %v304_v26 = vpop.f32.mrb[1].mxu0 }
  0xec   : > { %v379_v27 = vadd.f32 %v1236_v25, %v1228_v24  ;;  %v370_v28 = vpop.f32.mrb[1].mxu1  ;;  %v1229_v29 = vpop.f32.mrb[2].mxu0 }
  0xed   : > { %v371_v30 = vadd.f32 %v370_v28, %v304_v26  ;;  %v1237_v31 = vpop.f32.mrb[2].mxu1  ;;  %v307_v32 = vpop.f32.mrb[3].mxu0 }
  0xee   : > { %v373_v33 = vpop.f32.mrb[3].mxu1 }
  0xef   : > { %v374_v34 = vadd.f32 %v373_v33, %v307_v32  ;;  %v1178_v32 = vld [vmem:[%s1521_s4] ss:$0 sm:$0xff] }
  0xf2   : > { %v1244_v35 = vpop.f32.mrb[4].mxu0 }
  0xf3   : > { %v465_v36 = vadd.f32 %v1244_v35, %v379_v27  ;;  %v449_v37 = vpop.f32.mrb[5].mxu0  ;;  %v1252_v38 = vpop.f32.mrb[4].mxu1 }
  0xf4   : > { %v463_v39 = vadd.f32 %v449_v37, %v371_v30  ;;  %v1245_v40 = vpop.f32.mrb[6].mxu0  ;;  %v531_v43 = vpop.f32.mrb[5].mxu1 }
  0xf5   : > { %v547_v44 = vadd.f32 %v1252_v38, %v465_v36  ;;  %v452_v45 = vpop.f32.mrb[7].mxu0  ;;  %v1253_v46 = vpop.f32.mrb[6].mxu1 }
  0xf6   : > { %v464_v47 = vadd.f32 %v452_v45, %v374_v34  ;;  %v545_v49 = vadd.f32 %v531_v43, %v463_v39  ;;  %v534_v50 = vpop.f32.mrb[7].mxu1 }
  0xf8   : > { %v546_v51 = vadd.f32 %v534_v50, %v464_v47 }
  0xfa   : > { %v1260_v52 = vpop.f32.mrb[8].mxu0 }
  0xfb   : > { %v629_v53 = vadd.f32 %v1260_v52, %v547_v44  ;;  %v613_v54 = vpop.f32.mrb[9].mxu0  ;;  %v1268_v55 = vpop.f32.mrb[8].mxu1 }
  0xfc   : > { %v627_v56 = vadd.f32 %v613_v54, %v545_v49  ;;  %v1261_v57 = vpop.f32.mrb[10].mxu0  ;;  %v695_v58 = vpop.f32.mrb[9].mxu1 }
  0xfd   : > { %v711_v59 = vadd.f32 %v1268_v55, %v629_v53  ;;  %v616_v60 = vpop.f32.mrb[11].mxu0  ;;  %v1269_v61 = vpop.f32.mrb[10].mxu1 }
  0xfe   : > { %v628_v62 = vadd.f32 %v616_v60, %v546_v51  ;;  %v709_v63 = vadd.f32 %v695_v58, %v627_v56  ;;  %v698_v0 = vpop.f32.mrb[11].mxu1 }
 0x100   : > { %v710_v1 = vadd.f32 %v698_v0, %v628_v62 }
 0x102   : > { %v1276_v2 = vpop.f32.mrb[12].mxu0 }
 0x103   : > { %v793_v3 = vadd.f32 %v1276_v2, %v711_v59  ;;  %v777_v4 = vpop.f32.mrb[13].mxu0  ;;  %v1284_v5 = vpop.f32.mrb[12].mxu1 }
 0x104   : > { %v791_v6 = vadd.f32 %v777_v4, %v709_v63  ;;  %v1277_v7 = vpop.f32.mrb[14].mxu0  ;;  %v859_v8 = vpop.f32.mrb[13].mxu1 }
 0x105   : > { %v875_v9 = vadd.f32 %v1284_v5, %v793_v3  ;;  %v780_v10 = vpop.f32.mrb[15].mxu0  ;;  %v1285_v11 = vpop.f32.mrb[14].mxu1 }
 0x106   : > { %v792_v12 = vadd.f32 %v780_v10, %v710_v1  ;;  %v873_v13 = vadd.f32 %v859_v8, %v791_v6  ;;  %v862_v14 = vpop.f32.mrb[15].mxu1 }
 0x108   : > { %v874_v15 = vadd.f32 %v862_v14, %v792_v12 }
 0x10a   : > { %v1292_v16 = vpop.f32.mrb[16].mxu0 }
 0x10b   : > { %v957_v18 = vadd.f32 %v1292_v16, %v875_v9  ;;  %v941_v19 = vpop.f32.mrb[17].mxu0 }
 0x10c   : > { %v955_v20 = vadd.f32 %v941_v19, %v873_v13  ;;  %v1293_v21 = vpop.f32.mrb[18].mxu0 }
 0x10d   : > { %v967_v22 = vadd.f32 %v1177_v17, %v957_v18  ;;  %v944_v23 = vpop.f32.mrb[19].mxu0 }
 0x10e   : > { %v965_v24 = vadd.f32 %v1177_v17, %v955_v20  ;;  %v956_v25 = vadd.f32 %v944_v23, %v874_v15 }
 0x10f   : > { %v970_v27 = vmax.f32 %v967_v22, 0.0 }
 0x110   : > { %v966_v26 = vadd.f32 %v1177_v17, %v956_v25  ;;  %v968_v28 = vmax.f32 %v965_v24, 0.0 }
 0x111   : > { %v972_v31 = vpack.c.bf16 %v970_v27, %v970_v27 }
 0x112   : > { %v969_v29 = vmax.f32 %v966_v26, 0.0 }
 0x114   : > { %v971_v30 = vpack.c.bf16 %v969_v29, %v968_v28 }
 0x116   : > { %1296 = vmatprep.mubr.msk.bf16.mxu1 %vm981_vm2, %v971_v30 }
 0x117   : > { %1297 = vmatmul.mubr.msk.bf16.vlgmr.msra.gmra.mrb[16].mxu1 %vm981_vm2, %v972_v31 }
 0x1ea   : > { %v1298_v33 = vpop.f32.mrb[16].mxu1 }
 0x1eb   : > { %v1035_v34 = vadd.f32 %v1298_v33, %v1178_v32  ;;  %v1026_v35 = vpop.f32.mrb[17].mxu1 }
 0x1ec   : > { %v1027_v36 = vadd.f32 %v1178_v32, %v1026_v35  ;;  %v1299_v37 = vpop.f32.mrb[18].mxu1 }
 0x1ed   : > { %v1042_v38 = vadd.f32 %v1035_v34, %v1449_v48  ;;  %v1029_v39 = vpop.f32.mrb[19].mxu1 }
 0x1ee   : > { %v1040_v40 = vadd.f32 %v1027_v36, %v1436_v41  ;;  %v1030_v43 = vadd.f32 %v1178_v32, %v1029_v39 }
 0x1ef   : > { %1046 = vst.msk [vmem:[%s224_s23 + $0x10] sm:$0x3f] %vm1045_vm3, %v1042_v38 }
 0x1f0   : > { %1043 = vst.msk [vmem:[%s224_s23] sm:$0xff] %vm263_vm0, %v1040_v40  ;;  %v1041_v44 = vadd.f32 %v1030_v43, %v1439_v42 }
 0x1f2   : > { %1044 = vst.msk [vmem:[%s224_s23 + $0x8] sm:$0xff] %vm263_vm0, %v1041_v44 }
 0x1f3 PF: > { %s15_s18 = sadd.s32 1, %s1335_s18  }
 0x1f4   : > { %p12_p4 = scmp.ge.s32.totalorder %s15_s18, 4  }
 0x1f6   :  { %14 = sbr.rel (!%p12_p4) target bundleno = 1 (0x1), region = 78 }

</bundles_post_ra>
